<compile_context>
chip_gen: v6e
topology: v6e:2x2x1
jax: 0.10.0
libtpu: 0.0.40
codegen_flags: <defaults>
</compile_context>

<pallas_src>
import functools

import jax
import jax.numpy as jnp
from jax import lax
from jax.experimental import pallas as pl
from jax.experimental.pallas import tpu as pltpu


def _round_up(n, m):
    return ((n + m - 1) // m) * m


def seq2seq_kernel(enc_pre_ref,   # (S, Bp, H)  f32  encoder input proj (+ enc bias)
                   dec_x0_ref,    # (Bp, H)     f32  W_dec[source[:,0]] (no bias)
                   w_hh_e_ref,    # (H, H)      cdt
                   w_hh_d_ref,    # (H, H)      cdt
                   w_dec_ref,     # (Vp, H)     cdt  fused W_emb_d @ W_ih_d (padded rows 0)
                   b_d_ref,       # (1, H)      f32
                   w_out_ref,     # (H, Vp)     cdt  padded cols zero
                   b_out_ref,     # (1, Vp)     f32  padded lanes -1e30
                   out_ref,       # (T, Bp, Vp) f32  log-prob block for this chunk
                   x_scr,         # (Bp, H)     f32  carried next-input projection
                   h_scr,         # (Bp, H)     f32  carried decoder hidden state
                   *, steps_per_chunk, enc_unroll, cdt):
    c = pl.program_id(0)
    S, Bp, H = enc_pre_ref.shape
    Vp = w_out_ref.shape[1]

    # ---- encoder: runs once at chunk 0; scratch state persists across chunks
    @pl.when(c == 0)
    def _encode_and_init():
        w_hh_e = w_hh_e_ref[...]

        def enc_step(t, h):
            # h_{t+1} = tanh(x_t @ W_ih + b  +  h_t @ W_hh); the first term is
            # precomputed (gathered) in the wrapper -> one matmul per step.
            return jnp.tanh(
                enc_pre_ref[t]
                + jnp.dot(h.astype(cdt), w_hh_e,
                          preferred_element_type=jnp.float32))

        h0 = lax.fori_loop(0, S, enc_step,
                           jnp.zeros((Bp, H), jnp.float32), unroll=enc_unroll)
        h_scr[...] = h0
        x_scr[...] = dec_x0_ref[...]

    # ---- T greedy decode steps per grid iteration (unrolled) ---------------
    w_hh_d = w_hh_d_ref[...]
    w_out = w_out_ref[...]
    w_dec = w_dec_ref[...]
    b_d = b_d_ref[...]
    b_out = b_out_ref[...]
    iota = lax.broadcasted_iota(jnp.int32, (Bp, Vp), 1)   # hoisted out of loop

    x = x_scr[...]
    h = h_scr[...]
    for t in range(steps_per_chunk):
        h = jnp.tanh(x
                     + jnp.dot(h.astype(cdt), w_hh_d,
                               preferred_element_type=jnp.float32)
                     + b_d)                                           # (Bp, H)
        logits = jnp.dot(h.astype(cdt), w_out,
                         preferred_element_type=jnp.float32) + b_out  # (Bp, Vp)

        m = jnp.max(logits, axis=-1, keepdims=True)
        logp = logits - (m + jnp.log(jnp.sum(jnp.exp(logits - m),
                                             axis=-1, keepdims=True)))
        out_ref[t] = logp

        # greedy next token: lowest-index max (== jnp.argmax), reusing `m`.
        nxt = jnp.min(jnp.where(logits == m, iota, Vp),
                      axis=-1, keepdims=True)
        onehot = (iota == nxt).astype(cdt)
        # TODO(synk): index gather of w_dec rows instead of one-hot matmul.
        x = jnp.dot(onehot, w_dec, preferred_element_type=jnp.float32)

    x_scr[...] = x
    h_scr[...] = h


def _const_spec(shape):
    n = len(shape)
    return pl.BlockSpec(shape, lambda c, _n=n: (0,) * _n)


def seq2seq_forward(source, params, vocab_size, *,
                    compute_dtype=jnp.float32, steps_per_chunk=8):
    """source: (B, S) int32 token ids. Returns (B, S, V) log-probs (f32)."""
    (w_emb_e, w_ih_e, w_hh_e, b_e,
     w_emb_d, w_ih_d, w_hh_d, b_d, w_out, b_out) = params
    B, S = source.shape
    V = vocab_size
    H = w_hh_e.shape[0]
    Bp = _round_up(B, 8)          # sublane-dense batch
    Vp = _round_up(V, 128)        # lane-dense vocab
    f32 = jnp.float32
    cdt = compute_dtype

    T = max(1, min(steps_per_chunk, S))
    n_chunks = pl.cdiv(S, T)
    S_pad = n_chunks * T          # extra trailing steps are computed & discarded

    # --- offline algebraic fusions (exact: no nonlinearity in between) ------
    # encoder: per-step input projection is a gather from W_enc = W_emb @ W_ih
    w_enc = jnp.dot(w_emb_e, w_ih_e)                             # (V, H)
    src_p = jnp.pad(source, ((0, Bp - B), (0, 0)))               # (Bp, S), pad id 0
    enc_pre = (w_enc[src_p] + b_e).astype(f32)                   # (Bp, S, H)
    enc_pre = jnp.transpose(enc_pre, (1, 0, 2))                  # (S, Bp, H)

    # decoder: fuse embedding + W_ih; first decoder input gathered here
    w_dec_f = jnp.dot(w_emb_d, w_ih_d)                           # (V, H)
    dec_x0 = w_dec_f[src_p[:, 0]].astype(f32)                    # (Bp, H)
    w_dec_p = jnp.pad(w_dec_f, ((0, Vp - V), (0, 0))).astype(cdt)  # (Vp, H)

    # lane-padded output projection; padded logit lanes forced to -1e30
    w_out_p = jnp.pad(w_out, ((0, 0), (0, Vp - V))).astype(cdt)    # (H, Vp)
    b_out_p = jnp.pad(b_out, ((0, 0), (0, Vp - V)),
                      constant_values=-1e30).astype(f32)           # (1, Vp)

    inputs = (enc_pre, dec_x0, w_hh_e.astype(cdt), w_hh_d.astype(cdt),
              w_dec_p, b_d.astype(f32), w_out_p, b_out_p)

    kern = functools.partial(seq2seq_kernel,
                             steps_per_chunk=T,
                             enc_unroll=min(S, 8),
                             cdt=cdt)

    out_tm = pl.pallas_call(
        kern,
        out_shape=jax.ShapeDtypeStruct((S_pad, Bp, Vp), jnp.float32),
        grid_spec=pltpu.PrefetchScalarGridSpec(
            num_scalar_prefetch=0,
            grid=(n_chunks,),                           # T decode steps / iter
            in_specs=[_const_spec(x.shape) for x in inputs],  # resident, DMA'd once
            out_specs=pl.BlockSpec((T, Bp, Vp), lambda c: (c, 0, 0)),  # streamed
            scratch_shapes=[pltpu.VMEM((Bp, H), jnp.float32),   # x (input proj)
                            pltpu.VMEM((Bp, H), jnp.float32)],  # h (hidden)
        ),
        compiler_params=pltpu.CompilerParams(
            dimension_semantics=("arbitrary",),         # sequential recurrence
            vmem_limit_bytes=48 * 1024 * 1024),
    )(*inputs)

    # strip padding, back to the PyTorch (B, S, V) convention
    return jnp.transpose(out_tm[:S, :B, :V], (1, 0, 2))


def reference_forward(source, params, vocab_size):
    """Pure-JAX reference mirroring the PyTorch Seq2Seq.forward semantics."""
    (w_emb_e, w_ih_e, w_hh_e, b_e,
     w_emb_d, w_ih_d, w_hh_d, b_d, w_out, b_out) = params
    B, S = source.shape
    H = w_hh_e.shape[0]

    h = jnp.zeros((B, H), jnp.float32)
    for t in range(S):
        x = w_emb_e[source[:, t]]                      # embedding lookup
        h = jnp.tanh(x @ w_ih_e + h @ w_hh_e + b_e)

    tok = source[:, 0]
    outs = []
    for t in range(S):
        emb = w_emb_d[tok]
        h = jnp.tanh(emb @ w_ih_d + h @ w_hh_d + b_d)
        logits = h @ w_out + b_out
        logp = jax.nn.log_softmax(logits, axis=-1)
        outs.append(logp)
        tok = jnp.argmax(logp, axis=-1)                # greedy (topk-1)
    return jnp.stack(outs, axis=1)


def init_params(key, vocab, emb, hidden):
    ks = jax.random.split(key, 10)
    s = 0.1
    return (
        s * jax.random.normal(ks[0], (vocab, emb), jnp.float32),     # enc embedding
        s * jax.random.normal(ks[1], (emb, hidden), jnp.float32),    # enc W_ih
        s * jax.random.normal(ks[2], (hidden, hidden), jnp.float32), # enc W_hh
        s * jax.random.normal(ks[3], (1, hidden), jnp.float32),      # enc bias
        s * jax.random.normal(ks[4], (vocab, emb), jnp.float32),     # dec embedding
        s * jax.random.normal(ks[5], (emb, hidden), jnp.float32),    # dec W_ih
        s * jax.random.normal(ks[6], (hidden, hidden), jnp.float32), # dec W_hh
        s * jax.random.normal(ks[7], (1, hidden), jnp.float32),      # dec bias
        s * jax.random.normal(ks[8], (hidden, vocab), jnp.float32),  # output proj
        s * jax.random.normal(ks[9], (1, vocab), jnp.float32),       # output bias
    )


if __name__ == "__main__":
    B, S, V, E, H = 2, 8, 16, 32, 32

    key = jax.random.PRNGKey(0)
    k_src, k_par = jax.random.split(key)
    source = jax.random.randint(k_src, (B, S), 0, V, dtype=jnp.int32)
    params = init_params(k_par, V, E, H)

    # f32 path: checked against the pure-JAX reference.
    out = seq2seq_forward(source, params, V)
    out = jax.block_until_ready(out)

    ref = reference_forward(source, params, V)
    assert out.shape == (B, S, V), out.shape
    assert bool(jnp.all(jnp.isfinite(out)))
    assert jnp.allclose(out, ref, atol=1e-3, rtol=1e-3), (
        float(jnp.max(jnp.abs(out - ref))))

    # bf16 MXU-operand path (f32 accumulation): exercised for compile/run only;
    # greedy feedback may legitimately diverge token-wise under lower precision.
    out_bf16 = jax.block_until_ready(
        seq2seq_forward(source, params, V, compute_dtype=jnp.bfloat16))
    assert out_bf16.shape == (B, S, V)
    assert bool(jnp.all(jnp.isfinite(out_bf16)))

    print("KERNEL_OK")
</pallas_src>

<mosaic_0001>
module attributes {stable_mosaic.version = 11 : i64} {
  func.func @seq2seq_kernel(%arg0: i32, %arg1: memref<8x8x32xf32, #tpu.memory_space<vmem>>, %arg2: memref<8x32xf32, #tpu.memory_space<vmem>>, %arg3: memref<32x32xf32, #tpu.memory_space<vmem>>, %arg4: memref<32x32xf32, #tpu.memory_space<vmem>>, %arg5: memref<128x32xf32, #tpu.memory_space<vmem>>, %arg6: memref<1x32xf32, #tpu.memory_space<vmem>>, %arg7: memref<32x128xf32, #tpu.memory_space<vmem>>, %arg8: memref<1x128xf32, #tpu.memory_space<vmem>>, %arg9: memref<8x8x128xf32, #tpu.memory_space<vmem>>, %arg10: memref<8x32xf32, #tpu.memory_space<vmem>>, %arg11: memref<8x32xf32, #tpu.memory_space<vmem>>) attributes {dimension_semantics = [#tpu.dimension_semantics<arbitrary>], iteration_bounds = array<i64: 1>, scalar_prefetch = 0 : i64, scratch_operands = 2 : i64, tpu.core_type = #tpu.core_type<tc>, window_params = [{pipeline_mode = #tpu.pipeline_mode<synchronous>, transform_indices = @transform_0, window_bounds = array<i64: 8, 8, 32>}, {pipeline_mode = #tpu.pipeline_mode<synchronous>, transform_indices = @transform_1, window_bounds = array<i64: 8, 32>}, {pipeline_mode = #tpu.pipeline_mode<synchronous>, transform_indices = @transform_2, window_bounds = array<i64: 32, 32>}, {pipeline_mode = #tpu.pipeline_mode<synchronous>, transform_indices = @transform_3, window_bounds = array<i64: 32, 32>}, {pipeline_mode = #tpu.pipeline_mode<synchronous>, transform_indices = @transform_4, window_bounds = array<i64: 128, 32>}, {pipeline_mode = #tpu.pipeline_mode<synchronous>, transform_indices = @transform_5, window_bounds = array<i64: 1, 32>}, {pipeline_mode = #tpu.pipeline_mode<synchronous>, transform_indices = @transform_6, window_bounds = array<i64: 32, 128>}, {pipeline_mode = #tpu.pipeline_mode<synchronous>, transform_indices = @transform_7, window_bounds = array<i64: 1, 128>}, {transform_indices = @transform_8, window_bounds = array<i64: 8, 8, 128>}]} {
    %c0_i32 = arith.constant 0 : i32
    %0 = arith.cmpi eq, %arg0, %c0_i32 : i32
    %1 = arith.extui %0 : i1 to i32
    %c0_i32_0 = arith.constant 0 : i32
    %2 = arith.cmpi ne, %1, %c0_i32_0 : i32
    scf.if %2 {
      %c0_89 = arith.constant 0 : index
      %c0_90 = arith.constant 0 : index
      %277 = vector.load %arg3[%c0_89, %c0_90] : memref<32x32xf32, #tpu.memory_space<vmem>>, vector<32x32xf32>
      %cst_91 = arith.constant 0.000000e+00 : f32
      %278 = vector.broadcast %cst_91 : f32 to vector<8x32xf32>
      %c0_i32_92 = arith.constant 0 : i32
      %279 = arith.index_cast %c0_i32_92 : i32 to index
      %c0_93 = arith.constant 0 : index
      %c0_94 = arith.constant 0 : index
      %280 = vector.load %arg1[%279, %c0_93, %c0_94] : memref<8x8x32xf32, #tpu.memory_space<vmem>>, vector<1x8x32xf32>
      %281 = vector.shape_cast %280 : vector<1x8x32xf32> to vector<8x32xf32>
      %cst_95 = arith.constant dense<0.000000e+00> : vector<8x32xf32>
      %282 = tpu.matmul %278, %277, %cst_95 {dimension_numbers = #tpu.dot_dimension_numbers<[1], [0], [0], [1], [0, 0, 1, 1], [], []>} : vector<8x32xf32>, vector<32x32xf32>, vector<8x32xf32> -> vector<8x32xf32>
      %283 = arith.addf %281, %282 : vector<8x32xf32>
      %284 = math.tanh %283 : vector<8x32xf32>
      %c1_i32 = arith.constant 1 : i32
      %285 = arith.index_cast %c1_i32 : i32 to index
      %c0_96 = arith.constant 0 : index
      %c0_97 = arith.constant 0 : index
      %286 = vector.load %arg1[%285, %c0_96, %c0_97] : memref<8x8x32xf32, #tpu.memory_space<vmem>>, vector<1x8x32xf32>
      %287 = vector.shape_cast %286 : vector<1x8x32xf32> to vector<8x32xf32>
      %cst_98 = arith.constant dense<0.000000e+00> : vector<8x32xf32>
      %288 = tpu.matmul %284, %277, %cst_98 {dimension_numbers = #tpu.dot_dimension_numbers<[1], [0], [0], [1], [0, 0, 1, 1], [], []>} : vector<8x32xf32>, vector<32x32xf32>, vector<8x32xf32> -> vector<8x32xf32>
      %289 = arith.addf %287, %288 : vector<8x32xf32>
      %290 = math.tanh %289 : vector<8x32xf32>
      %c2_i32 = arith.constant 2 : i32
      %291 = arith.index_cast %c2_i32 : i32 to index
      %c0_99 = arith.constant 0 : index
      %c0_100 = arith.constant 0 : index
      %292 = vector.load %arg1[%291, %c0_99, %c0_100] : memref<8x8x32xf32, #tpu.memory_space<vmem>>, vector<1x8x32xf32>
      %293 = vector.shape_cast %292 : vector<1x8x32xf32> to vector<8x32xf32>
      %cst_101 = arith.constant dense<0.000000e+00> : vector<8x32xf32>
      %294 = tpu.matmul %290, %277, %cst_101 {dimension_numbers = #tpu.dot_dimension_numbers<[1], [0], [0], [1], [0, 0, 1, 1], [], []>} : vector<8x32xf32>, vector<32x32xf32>, vector<8x32xf32> -> vector<8x32xf32>
      %295 = arith.addf %293, %294 : vector<8x32xf32>
      %296 = math.tanh %295 : vector<8x32xf32>
      %c3_i32 = arith.constant 3 : i32
      %297 = arith.index_cast %c3_i32 : i32 to index
      %c0_102 = arith.constant 0 : index
      %c0_103 = arith.constant 0 : index
      %298 = vector.load %arg1[%297, %c0_102, %c0_103] : memref<8x8x32xf32, #tpu.memory_space<vmem>>, vector<1x8x32xf32>
      %299 = vector.shape_cast %298 : vector<1x8x32xf32> to vector<8x32xf32>
      %cst_104 = arith.constant dense<0.000000e+00> : vector<8x32xf32>
      %300 = tpu.matmul %296, %277, %cst_104 {dimension_numbers = #tpu.dot_dimension_numbers<[1], [0], [0], [1], [0, 0, 1, 1], [], []>} : vector<8x32xf32>, vector<32x32xf32>, vector<8x32xf32> -> vector<8x32xf32>
      %301 = arith.addf %299, %300 : vector<8x32xf32>
      %302 = math.tanh %301 : vector<8x32xf32>
      %c4_i32 = arith.constant 4 : i32
      %303 = arith.index_cast %c4_i32 : i32 to index
      %c0_105 = arith.constant 0 : index
      %c0_106 = arith.constant 0 : index
      %304 = vector.load %arg1[%303, %c0_105, %c0_106] : memref<8x8x32xf32, #tpu.memory_space<vmem>>, vector<1x8x32xf32>
      %305 = vector.shape_cast %304 : vector<1x8x32xf32> to vector<8x32xf32>
      %cst_107 = arith.constant dense<0.000000e+00> : vector<8x32xf32>
      %306 = tpu.matmul %302, %277, %cst_107 {dimension_numbers = #tpu.dot_dimension_numbers<[1], [0], [0], [1], [0, 0, 1, 1], [], []>} : vector<8x32xf32>, vector<32x32xf32>, vector<8x32xf32> -> vector<8x32xf32>
      %307 = arith.addf %305, %306 : vector<8x32xf32>
      %308 = math.tanh %307 : vector<8x32xf32>
      %c5_i32 = arith.constant 5 : i32
      %309 = arith.index_cast %c5_i32 : i32 to index
      %c0_108 = arith.constant 0 : index
      %c0_109 = arith.constant 0 : index
      %310 = vector.load %arg1[%309, %c0_108, %c0_109] : memref<8x8x32xf32, #tpu.memory_space<vmem>>, vector<1x8x32xf32>
      %311 = vector.shape_cast %310 : vector<1x8x32xf32> to vector<8x32xf32>
      %cst_110 = arith.constant dense<0.000000e+00> : vector<8x32xf32>
      %312 = tpu.matmul %308, %277, %cst_110 {dimension_numbers = #tpu.dot_dimension_numbers<[1], [0], [0], [1], [0, 0, 1, 1], [], []>} : vector<8x32xf32>, vector<32x32xf32>, vector<8x32xf32> -> vector<8x32xf32>
      %313 = arith.addf %311, %312 : vector<8x32xf32>
      %314 = math.tanh %313 : vector<8x32xf32>
      %c6_i32 = arith.constant 6 : i32
      %315 = arith.index_cast %c6_i32 : i32 to index
      %c0_111 = arith.constant 0 : index
      %c0_112 = arith.constant 0 : index
      %316 = vector.load %arg1[%315, %c0_111, %c0_112] : memref<8x8x32xf32, #tpu.memory_space<vmem>>, vector<1x8x32xf32>
      %317 = vector.shape_cast %316 : vector<1x8x32xf32> to vector<8x32xf32>
      %cst_113 = arith.constant dense<0.000000e+00> : vector<8x32xf32>
      %318 = tpu.matmul %314, %277, %cst_113 {dimension_numbers = #tpu.dot_dimension_numbers<[1], [0], [0], [1], [0, 0, 1, 1], [], []>} : vector<8x32xf32>, vector<32x32xf32>, vector<8x32xf32> -> vector<8x32xf32>
      %319 = arith.addf %317, %318 : vector<8x32xf32>
      %320 = math.tanh %319 : vector<8x32xf32>
      %c7_i32 = arith.constant 7 : i32
      %321 = arith.index_cast %c7_i32 : i32 to index
      %c0_114 = arith.constant 0 : index
      %c0_115 = arith.constant 0 : index
      %322 = vector.load %arg1[%321, %c0_114, %c0_115] : memref<8x8x32xf32, #tpu.memory_space<vmem>>, vector<1x8x32xf32>
      %323 = vector.shape_cast %322 : vector<1x8x32xf32> to vector<8x32xf32>
      %cst_116 = arith.constant dense<0.000000e+00> : vector<8x32xf32>
      %324 = tpu.matmul %320, %277, %cst_116 {dimension_numbers = #tpu.dot_dimension_numbers<[1], [0], [0], [1], [0, 0, 1, 1], [], []>} : vector<8x32xf32>, vector<32x32xf32>, vector<8x32xf32> -> vector<8x32xf32>
      %325 = arith.addf %323, %324 : vector<8x32xf32>
      %326 = math.tanh %325 : vector<8x32xf32>
      %c8_i32 = arith.constant 8 : i32
      %c0_117 = arith.constant 0 : index
      %c0_118 = arith.constant 0 : index
      %327 = vector.load %arg11[%c0_117, %c0_118] : memref<8x32xf32, #tpu.memory_space<vmem>>, vector<8x32xf32>
      tpu.vector_store %arg11[%c0_117, %c0_118], %326 {strides = array<i32>} : memref<8x32xf32, #tpu.memory_space<vmem>>, vector<8x32xf32>,
      %c0_119 = arith.constant 0 : index
      %c0_120 = arith.constant 0 : index
      %328 = vector.load %arg2[%c0_119, %c0_120] : memref<8x32xf32, #tpu.memory_space<vmem>>, vector<8x32xf32>
      %c0_121 = arith.constant 0 : index
      %c0_122 = arith.constant 0 : index
      %329 = vector.load %arg10[%c0_121, %c0_122] : memref<8x32xf32, #tpu.memory_space<vmem>>, vector<8x32xf32>
      tpu.vector_store %arg10[%c0_121, %c0_122], %328 {strides = array<i32>} : memref<8x32xf32, #tpu.memory_space<vmem>>, vector<8x32xf32>,
    } else {
    }
    %c0 = arith.constant 0 : index
    %c0_1 = arith.constant 0 : index
    %3 = vector.load %arg4[%c0, %c0_1] : memref<32x32xf32, #tpu.memory_space<vmem>>, vector<32x32xf32>
    %c0_2 = arith.constant 0 : index
    %c0_3 = arith.constant 0 : index
    %4 = vector.load %arg7[%c0_2, %c0_3] : memref<32x128xf32, #tpu.memory_space<vmem>>, vector<32x128xf32>
    %c0_4 = arith.constant 0 : index
    %c0_5 = arith.constant 0 : index
    %5 = vector.load %arg5[%c0_4, %c0_5] : memref<128x32xf32, #tpu.memory_space<vmem>>, vector<128x32xf32>
    %c0_6 = arith.constant 0 : index
    %c0_7 = arith.constant 0 : index
    %6 = vector.load %arg6[%c0_6, %c0_7] : memref<1x32xf32, #tpu.memory_space<vmem>>, vector<1x32xf32>
    %c0_8 = arith.constant 0 : index
    %c0_9 = arith.constant 0 : index
    %7 = vector.load %arg8[%c0_8, %c0_9] : memref<1x128xf32, #tpu.memory_space<vmem>>, vector<1x128xf32>
    %8 = tpu.iota {dimensions = array<i32: 1>} : vector<8x128xi32>
    %c0_10 = arith.constant 0 : index
    %c0_11 = arith.constant 0 : index
    %9 = vector.load %arg10[%c0_10, %c0_11] : memref<8x32xf32, #tpu.memory_space<vmem>>, vector<8x32xf32>
    %c0_12 = arith.constant 0 : index
    %c0_13 = arith.constant 0 : index
    %10 = vector.load %arg11[%c0_12, %c0_13] : memref<8x32xf32, #tpu.memory_space<vmem>>, vector<8x32xf32>
    %cst = arith.constant dense<0.000000e+00> : vector<8x32xf32>
    %11 = tpu.matmul %10, %3, %cst {dimension_numbers = #tpu.dot_dimension_numbers<[1], [0], [0], [1], [0, 0, 1, 1], [], []>} : vector<8x32xf32>, vector<32x32xf32>, vector<8x32xf32> -> vector<8x32xf32>
    %12 = arith.addf %9, %11 : vector<8x32xf32>
    %13 = vector.broadcast %6 : vector<1x32xf32> to vector<8x32xf32>
    %14 = arith.addf %12, %13 : vector<8x32xf32>
    %15 = math.tanh %14 : vector<8x32xf32>
    %cst_14 = arith.constant dense<0.000000e+00> : vector<8x128xf32>
    %16 = tpu.matmul %15, %4, %cst_14 {dimension_numbers = #tpu.dot_dimension_numbers<[1], [0], [0], [1], [0, 0, 1, 1], [], []>} : vector<8x32xf32>, vector<32x128xf32>, vector<8x128xf32> -> vector<8x128xf32>
    %17 = vector.broadcast %7 : vector<1x128xf32> to vector<8x128xf32>
    %18 = arith.addf %16, %17 : vector<8x128xf32>
    %cst_15 = arith.constant dense<0xFF800000> : vector<8xf32>
    %19 = vector.multi_reduction <maximumf>, %18, %cst_15 [1] : vector<8x128xf32> to vector<8xf32>
    %20 = vector.shape_cast %19 : vector<8xf32> to vector<8x1xf32>
    %21 = vector.broadcast %20 : vector<8x1xf32> to vector<8x128xf32>
    %22 = arith.subf %18, %21 : vector<8x128xf32>
    %23 = math.exp %22 : vector<8x128xf32>
    %cst_16 = arith.constant dense<0.000000e+00> : vector<8xf32>
    %24 = vector.multi_reduction <add>, %23, %cst_16 [1] : vector<8x128xf32> to vector<8xf32>
    %25 = vector.shape_cast %24 : vector<8xf32> to vector<8x1xf32>
    %26 = math.log %25 : vector<8x1xf32>
    %27 = arith.addf %20, %26 : vector<8x1xf32>
    %28 = vector.broadcast %27 : vector<8x1xf32> to vector<8x128xf32>
    %29 = arith.subf %18, %28 : vector<8x128xf32>
    %c0_17 = arith.constant 0 : index
    %c0_18 = arith.constant 0 : index
    %c0_19 = arith.constant 0 : index
    %30 = vector.load %arg9[%c0_17, %c0_18, %c0_19] : memref<8x8x128xf32, #tpu.memory_space<vmem>>, vector<1x8x128xf32>
    %31 = vector.shape_cast %30 : vector<1x8x128xf32> to vector<8x128xf32>
    %32 = vector.shape_cast %29 : vector<8x128xf32> to vector<1x8x128xf32>
    tpu.vector_store %arg9[%c0_17, %c0_18, %c0_19], %32 {strides = array<i32>} : memref<8x8x128xf32, #tpu.memory_space<vmem>>, vector<1x8x128xf32>,
    %33 = vector.broadcast %20 : vector<8x1xf32> to vector<8x128xf32>
    %34 = arith.cmpf oeq, %18, %33 : vector<8x128xf32>
    %c128_i32 = arith.constant 128 : i32
    %35 = vector.broadcast %c128_i32 : i32 to vector<8x128xi32>
    %36 = arith.select %34, %8, %35 : vector<8x128xi1>, vector<8x128xi32>
    %cst_20 = arith.constant dense<2147483647> : vector<8xi32>
    %37 = vector.multi_reduction <minsi>, %36, %cst_20 [1] : vector<8x128xi32> to vector<8xi32>
    %38 = vector.shape_cast %37 : vector<8xi32> to vector<8x1xi32>
    %39 = vector.broadcast %38 : vector<8x1xi32> to vector<8x128xi32>
    %40 = arith.cmpi eq, %8, %39 : vector<8x128xi32>
    %41 = arith.extui %40 : vector<8x128xi1> to vector<8x128xi32>
    %42 = arith.sitofp %41 : vector<8x128xi32> to vector<8x128xf32>
    %cst_21 = arith.constant dense<0.000000e+00> : vector<8x32xf32>
    %43 = tpu.matmul %42, %5, %cst_21 {dimension_numbers = #tpu.dot_dimension_numbers<[1], [0], [0], [1], [0, 0, 1, 1], [], []>} : vector<8x128xf32>, vector<128x32xf32>, vector<8x32xf32> -> vector<8x32xf32>
    %cst_22 = arith.constant dense<0.000000e+00> : vector<8x32xf32>
    %44 = tpu.matmul %15, %3, %cst_22 {dimension_numbers = #tpu.dot_dimension_numbers<[1], [0], [0], [1], [0, 0, 1, 1], [], []>} : vector<8x32xf32>, vector<32x32xf32>, vector<8x32xf32> -> vector<8x32xf32>
    %45 = arith.addf %43, %44 : vector<8x32xf32>
    %46 = vector.broadcast %6 : vector<1x32xf32> to vector<8x32xf32>
    %47 = arith.addf %45, %46 : vector<8x32xf32>
    %48 = math.tanh %47 : vector<8x32xf32>
    %cst_23 = arith.constant dense<0.000000e+00> : vector<8x128xf32>
    %49 = tpu.matmul %48, %4, %cst_23 {dimension_numbers = #tpu.dot_dimension_numbers<[1], [0], [0], [1], [0, 0, 1, 1], [], []>} : vector<8x32xf32>, vector<32x128xf32>, vector<8x128xf32> -> vector<8x128xf32>
    %50 = vector.broadcast %7 : vector<1x128xf32> to vector<8x128xf32>
    %51 = arith.addf %49, %50 : vector<8x128xf32>
    %cst_24 = arith.constant dense<0xFF800000> : vector<8xf32>
    %52 = vector.multi_reduction <maximumf>, %51, %cst_24 [1] : vector<8x128xf32> to vector<8xf32>
    %53 = vector.shape_cast %52 : vector<8xf32> to vector<8x1xf32>
    %54 = vector.broadcast %53 : vector<8x1xf32> to vector<8x128xf32>
    %55 = arith.subf %51, %54 : vector<8x128xf32>
    %56 = math.exp %55 : vector<8x128xf32>
    %cst_25 = arith.constant dense<0.000000e+00> : vector<8xf32>
    %57 = vector.multi_reduction <add>, %56, %cst_25 [1] : vector<8x128xf32> to vector<8xf32>
    %58 = vector.shape_cast %57 : vector<8xf32> to vector<8x1xf32>
    %59 = math.log %58 : vector<8x1xf32>
    %60 = arith.addf %53, %59 : vector<8x1xf32>
    %61 = vector.broadcast %60 : vector<8x1xf32> to vector<8x128xf32>
    %62 = arith.subf %51, %61 : vector<8x128xf32>
    %c1 = arith.constant 1 : index
    %c0_26 = arith.constant 0 : index
    %c0_27 = arith.constant 0 : index
    %63 = vector.load %arg9[%c1, %c0_26, %c0_27] : memref<8x8x128xf32, #tpu.memory_space<vmem>>, vector<1x8x128xf32>
    %64 = vector.shape_cast %63 : vector<1x8x128xf32> to vector<8x128xf32>
    %65 = vector.shape_cast %62 : vector<8x128xf32> to vector<1x8x128xf32>
    tpu.vector_store %arg9[%c1, %c0_26, %c0_27], %65 {strides = array<i32>} : memref<8x8x128xf32, #tpu.memory_space<vmem>>, vector<1x8x128xf32>,
    %66 = vector.broadcast %53 : vector<8x1xf32> to vector<8x128xf32>
    %67 = arith.cmpf oeq, %51, %66 : vector<8x128xf32>
    %c128_i32_28 = arith.constant 128 : i32
    %68 = vector.broadcast %c128_i32_28 : i32 to vector<8x128xi32>
    %69 = arith.select %67, %8, %68 : vector<8x128xi1>, vector<8x128xi32>
    %cst_29 = arith.constant dense<2147483647> : vector<8xi32>
    %70 = vector.multi_reduction <minsi>, %69, %cst_29 [1] : vector<8x128xi32> to vector<8xi32>
    %71 = vector.shape_cast %70 : vector<8xi32> to vector<8x1xi32>
    %72 = vector.broadcast %71 : vector<8x1xi32> to vector<8x128xi32>
    %73 = arith.cmpi eq, %8, %72 : vector<8x128xi32>
    %74 = arith.extui %73 : vector<8x128xi1> to vector<8x128xi32>
    %75 = arith.sitofp %74 : vector<8x128xi32> to vector<8x128xf32>
    %cst_30 = arith.constant dense<0.000000e+00> : vector<8x32xf32>
    %76 = tpu.matmul %75, %5, %cst_30 {dimension_numbers = #tpu.dot_dimension_numbers<[1], [0], [0], [1], [0, 0, 1, 1], [], []>} : vector<8x128xf32>, vector<128x32xf32>, vector<8x32xf32> -> vector<8x32xf32>
    %cst_31 = arith.constant dense<0.000000e+00> : vector<8x32xf32>
    %77 = tpu.matmul %48, %3, %cst_31 {dimension_numbers = #tpu.dot_dimension_numbers<[1], [0], [0], [1], [0, 0, 1, 1], [], []>} : vector<8x32xf32>, vector<32x32xf32>, vector<8x32xf32> -> vector<8x32xf32>
    %78 = arith.addf %76, %77 : vector<8x32xf32>
    %79 = vector.broadcast %6 : vector<1x32xf32> to vector<8x32xf32>
    %80 = arith.addf %78, %79 : vector<8x32xf32>
    %81 = math.tanh %80 : vector<8x32xf32>
    %cst_32 = arith.constant dense<0.000000e+00> : vector<8x128xf32>
    %82 = tpu.matmul %81, %4, %cst_32 {dimension_numbers = #tpu.dot_dimension_numbers<[1], [0], [0], [1], [0, 0, 1, 1], [], []>} : vector<8x32xf32>, vector<32x128xf32>, vector<8x128xf32> -> vector<8x128xf32>
    %83 = vector.broadcast %7 : vector<1x128xf32> to vector<8x128xf32>
    %84 = arith.addf %82, %83 : vector<8x128xf32>
    %cst_33 = arith.constant dense<0xFF800000> : vector<8xf32>
    %85 = vector.multi_reduction <maximumf>, %84, %cst_33 [1] : vector<8x128xf32> to vector<8xf32>
    %86 = vector.shape_cast %85 : vector<8xf32> to vector<8x1xf32>
    %87 = vector.broadcast %86 : vector<8x1xf32> to vector<8x128xf32>
    %88 = arith.subf %84, %87 : vector<8x128xf32>
    %89 = math.exp %88 : vector<8x128xf32>
    %cst_34 = arith.constant dense<0.000000e+00> : vector<8xf32>
    %90 = vector.multi_reduction <add>, %89, %cst_34 [1] : vector<8x128xf32> to vector<8xf32>
    %91 = vector.shape_cast %90 : vector<8xf32> to vector<8x1xf32>
    %92 = math.log %91 : vector<8x1xf32>
    %93 = arith.addf %86, %92 : vector<8x1xf32>
    %94 = vector.broadcast %93 : vector<8x1xf32> to vector<8x128xf32>
    %95 = arith.subf %84, %94 : vector<8x128xf32>
    %c2 = arith.constant 2 : index
    %c0_35 = arith.constant 0 : index
    %c0_36 = arith.constant 0 : index
    %96 = vector.load %arg9[%c2, %c0_35, %c0_36] : memref<8x8x128xf32, #tpu.memory_space<vmem>>, vector<1x8x128xf32>
    %97 = vector.shape_cast %96 : vector<1x8x128xf32> to vector<8x128xf32>
    %98 = vector.shape_cast %95 : vector<8x128xf32> to vector<1x8x128xf32>
    tpu.vector_store %arg9[%c2, %c0_35, %c0_36], %98 {strides = array<i32>} : memref<8x8x128xf32, #tpu.memory_space<vmem>>, vector<1x8x128xf32>,
    %99 = vector.broadcast %86 : vector<8x1xf32> to vector<8x128xf32>
    %100 = arith.cmpf oeq, %84, %99 : vector<8x128xf32>
    %c128_i32_37 = arith.constant 128 : i32
    %101 = vector.broadcast %c128_i32_37 : i32 to vector<8x128xi32>
    %102 = arith.select %100, %8, %101 : vector<8x128xi1>, vector<8x128xi32>
    %cst_38 = arith.constant dense<2147483647> : vector<8xi32>
    %103 = vector.multi_reduction <minsi>, %102, %cst_38 [1] : vector<8x128xi32> to vector<8xi32>
    %104 = vector.shape_cast %103 : vector<8xi32> to vector<8x1xi32>
    %105 = vector.broadcast %104 : vector<8x1xi32> to vector<8x128xi32>
    %106 = arith.cmpi eq, %8, %105 : vector<8x128xi32>
    %107 = arith.extui %106 : vector<8x128xi1> to vector<8x128xi32>
    %108 = arith.sitofp %107 : vector<8x128xi32> to vector<8x128xf32>
    %cst_39 = arith.constant dense<0.000000e+00> : vector<8x32xf32>
    %109 = tpu.matmul %108, %5, %cst_39 {dimension_numbers = #tpu.dot_dimension_numbers<[1], [0], [0], [1], [0, 0, 1, 1], [], []>} : vector<8x128xf32>, vector<128x32xf32>, vector<8x32xf32> -> vector<8x32xf32>
    %cst_40 = arith.constant dense<0.000000e+00> : vector<8x32xf32>
    %110 = tpu.matmul %81, %3, %cst_40 {dimension_numbers = #tpu.dot_dimension_numbers<[1], [0], [0], [1], [0, 0, 1, 1], [], []>} : vector<8x32xf32>, vector<32x32xf32>, vector<8x32xf32> -> vector<8x32xf32>
    %111 = arith.addf %109, %110 : vector<8x32xf32>
    %112 = vector.broadcast %6 : vector<1x32xf32> to vector<8x32xf32>
    %113 = arith.addf %111, %112 : vector<8x32xf32>
    %114 = math.tanh %113 : vector<8x32xf32>
    %cst_41 = arith.constant dense<0.000000e+00> : vector<8x128xf32>
    %115 = tpu.matmul %114, %4, %cst_41 {dimension_numbers = #tpu.dot_dimension_numbers<[1], [0], [0], [1], [0, 0, 1, 1], [], []>} : vector<8x32xf32>, vector<32x128xf32>, vector<8x128xf32> -> vector<8x128xf32>
    %116 = vector.broadcast %7 : vector<1x128xf32> to vector<8x128xf32>
    %117 = arith.addf %115, %116 : vector<8x128xf32>
    %cst_42 = arith.constant dense<0xFF800000> : vector<8xf32>
    %118 = vector.multi_reduction <maximumf>, %117, %cst_42 [1] : vector<8x128xf32> to vector<8xf32>
    %119 = vector.shape_cast %118 : vector<8xf32> to vector<8x1xf32>
    %120 = vector.broadcast %119 : vector<8x1xf32> to vector<8x128xf32>
    %121 = arith.subf %117, %120 : vector<8x128xf32>
    %122 = math.exp %121 : vector<8x128xf32>
    %cst_43 = arith.constant dense<0.000000e+00> : vector<8xf32>
    %123 = vector.multi_reduction <add>, %122, %cst_43 [1] : vector<8x128xf32> to vector<8xf32>
    %124 = vector.shape_cast %123 : vector<8xf32> to vector<8x1xf32>
    %125 = math.log %124 : vector<8x1xf32>
    %126 = arith.addf %119, %125 : vector<8x1xf32>
    %127 = vector.broadcast %126 : vector<8x1xf32> to vector<8x128xf32>
    %128 = arith.subf %117, %127 : vector<8x128xf32>
    %c3 = arith.constant 3 : index
    %c0_44 = arith.constant 0 : index
    %c0_45 = arith.constant 0 : index
    %129 = vector.load %arg9[%c3, %c0_44, %c0_45] : memref<8x8x128xf32, #tpu.memory_space<vmem>>, vector<1x8x128xf32>
    %130 = vector.shape_cast %129 : vector<1x8x128xf32> to vector<8x128xf32>
    %131 = vector.shape_cast %128 : vector<8x128xf32> to vector<1x8x128xf32>
    tpu.vector_store %arg9[%c3, %c0_44, %c0_45], %131 {strides = array<i32>} : memref<8x8x128xf32, #tpu.memory_space<vmem>>, vector<1x8x128xf32>,
    %132 = vector.broadcast %119 : vector<8x1xf32> to vector<8x128xf32>
    %133 = arith.cmpf oeq, %117, %132 : vector<8x128xf32>
    %c128_i32_46 = arith.constant 128 : i32
    %134 = vector.broadcast %c128_i32_46 : i32 to vector<8x128xi32>
    %135 = arith.select %133, %8, %134 : vector<8x128xi1>, vector<8x128xi32>
    %cst_47 = arith.constant dense<2147483647> : vector<8xi32>
    %136 = vector.multi_reduction <minsi>, %135, %cst_47 [1] : vector<8x128xi32> to vector<8xi32>
    %137 = vector.shape_cast %136 : vector<8xi32> to vector<8x1xi32>
    %138 = vector.broadcast %137 : vector<8x1xi32> to vector<8x128xi32>
    %139 = arith.cmpi eq, %8, %138 : vector<8x128xi32>
    %140 = arith.extui %139 : vector<8x128xi1> to vector<8x128xi32>
    %141 = arith.sitofp %140 : vector<8x128xi32> to vector<8x128xf32>
    %cst_48 = arith.constant dense<0.000000e+00> : vector<8x32xf32>
    %142 = tpu.matmul %141, %5, %cst_48 {dimension_numbers = #tpu.dot_dimension_numbers<[1], [0], [0], [1], [0, 0, 1, 1], [], []>} : vector<8x128xf32>, vector<128x32xf32>, vector<8x32xf32> -> vector<8x32xf32>
    %cst_49 = arith.constant dense<0.000000e+00> : vector<8x32xf32>
    %143 = tpu.matmul %114, %3, %cst_49 {dimension_numbers = #tpu.dot_dimension_numbers<[1], [0], [0], [1], [0, 0, 1, 1], [], []>} : vector<8x32xf32>, vector<32x32xf32>, vector<8x32xf32> -> vector<8x32xf32>
    %144 = arith.addf %142, %143 : vector<8x32xf32>
    %145 = vector.broadcast %6 : vector<1x32xf32> to vector<8x32xf32>
    %146 = arith.addf %144, %145 : vector<8x32xf32>
    %147 = math.tanh %146 : vector<8x32xf32>
    %cst_50 = arith.constant dense<0.000000e+00> : vector<8x128xf32>
    %148 = tpu.matmul %147, %4, %cst_50 {dimension_numbers = #tpu.dot_dimension_numbers<[1], [0], [0], [1], [0, 0, 1, 1], [], []>} : vector<8x32xf32>, vector<32x128xf32>, vector<8x128xf32> -> vector<8x128xf32>
    %149 = vector.broadcast %7 : vector<1x128xf32> to vector<8x128xf32>
    %150 = arith.addf %148, %149 : vector<8x128xf32>
    %cst_51 = arith.constant dense<0xFF800000> : vector<8xf32>
    %151 = vector.multi_reduction <maximumf>, %150, %cst_51 [1] : vector<8x128xf32> to vector<8xf32>
    %152 = vector.shape_cast %151 : vector<8xf32> to vector<8x1xf32>
    %153 = vector.broadcast %152 : vector<8x1xf32> to vector<8x128xf32>
    %154 = arith.subf %150, %153 : vector<8x128xf32>
    %155 = math.exp %154 : vector<8x128xf32>
    %cst_52 = arith.constant dense<0.000000e+00> : vector<8xf32>
    %156 = vector.multi_reduction <add>, %155, %cst_52 [1] : vector<8x128xf32> to vector<8xf32>
    %157 = vector.shape_cast %156 : vector<8xf32> to vector<8x1xf32>
    %158 = math.log %157 : vector<8x1xf32>
    %159 = arith.addf %152, %158 : vector<8x1xf32>
    %160 = vector.broadcast %159 : vector<8x1xf32> to vector<8x128xf32>
    %161 = arith.subf %150, %160 : vector<8x128xf32>
    %c4 = arith.constant 4 : index
    %c0_53 = arith.constant 0 : index
    %c0_54 = arith.constant 0 : index
    %162 = vector.load %arg9[%c4, %c0_53, %c0_54] : memref<8x8x128xf32, #tpu.memory_space<vmem>>, vector<1x8x128xf32>
    %163 = vector.shape_cast %162 : vector<1x8x128xf32> to vector<8x128xf32>
    %164 = vector.shape_cast %161 : vector<8x128xf32> to vector<1x8x128xf32>
    tpu.vector_store %arg9[%c4, %c0_53, %c0_54], %164 {strides = array<i32>} : memref<8x8x128xf32, #tpu.memory_space<vmem>>, vector<1x8x128xf32>,
    %165 = vector.broadcast %152 : vector<8x1xf32> to vector<8x128xf32>
    %166 = arith.cmpf oeq, %150, %165 : vector<8x128xf32>
    %c128_i32_55 = arith.constant 128 : i32
    %167 = vector.broadcast %c128_i32_55 : i32 to vector<8x128xi32>
    %168 = arith.select %166, %8, %167 : vector<8x128xi1>, vector<8x128xi32>
    %cst_56 = arith.constant dense<2147483647> : vector<8xi32>
    %169 = vector.multi_reduction <minsi>, %168, %cst_56 [1] : vector<8x128xi32> to vector<8xi32>
    %170 = vector.shape_cast %169 : vector<8xi32> to vector<8x1xi32>
    %171 = vector.broadcast %170 : vector<8x1xi32> to vector<8x128xi32>
    %172 = arith.cmpi eq, %8, %171 : vector<8x128xi32>
    %173 = arith.extui %172 : vector<8x128xi1> to vector<8x128xi32>
    %174 = arith.sitofp %173 : vector<8x128xi32> to vector<8x128xf32>
    %cst_57 = arith.constant dense<0.000000e+00> : vector<8x32xf32>
    %175 = tpu.matmul %174, %5, %cst_57 {dimension_numbers = #tpu.dot_dimension_numbers<[1], [0], [0], [1], [0, 0, 1, 1], [], []>} : vector<8x128xf32>, vector<128x32xf32>, vector<8x32xf32> -> vector<8x32xf32>
    %cst_58 = arith.constant dense<0.000000e+00> : vector<8x32xf32>
    %176 = tpu.matmul %147, %3, %cst_58 {dimension_numbers = #tpu.dot_dimension_numbers<[1], [0], [0], [1], [0, 0, 1, 1], [], []>} : vector<8x32xf32>, vector<32x32xf32>, vector<8x32xf32> -> vector<8x32xf32>
    %177 = arith.addf %175, %176 : vector<8x32xf32>
    %178 = vector.broadcast %6 : vector<1x32xf32> to vector<8x32xf32>
    %179 = arith.addf %177, %178 : vector<8x32xf32>
    %180 = math.tanh %179 : vector<8x32xf32>
    %cst_59 = arith.constant dense<0.000000e+00> : vector<8x128xf32>
    %181 = tpu.matmul %180, %4, %cst_59 {dimension_numbers = #tpu.dot_dimension_numbers<[1], [0], [0], [1], [0, 0, 1, 1], [], []>} : vector<8x32xf32>, vector<32x128xf32>, vector<8x128xf32> -> vector<8x128xf32>
    %182 = vector.broadcast %7 : vector<1x128xf32> to vector<8x128xf32>
    %183 = arith.addf %181, %182 : vector<8x128xf32>
    %cst_60 = arith.constant dense<0xFF800000> : vector<8xf32>
    %184 = vector.multi_reduction <maximumf>, %183, %cst_60 [1] : vector<8x128xf32> to vector<8xf32>
    %185 = vector.shape_cast %184 : vector<8xf32> to vector<8x1xf32>
    %186 = vector.broadcast %185 : vector<8x1xf32> to vector<8x128xf32>
    %187 = arith.subf %183, %186 : vector<8x128xf32>
    %188 = math.exp %187 : vector<8x128xf32>
    %cst_61 = arith.constant dense<0.000000e+00> : vector<8xf32>
    %189 = vector.multi_reduction <add>, %188, %cst_61 [1] : vector<8x128xf32> to vector<8xf32>
    %190 = vector.shape_cast %189 : vector<8xf32> to vector<8x1xf32>
    %191 = math.log %190 : vector<8x1xf32>
    %192 = arith.addf %185, %191 : vector<8x1xf32>
    %193 = vector.broadcast %192 : vector<8x1xf32> to vector<8x128xf32>
    %194 = arith.subf %183, %193 : vector<8x128xf32>
    %c5 = arith.constant 5 : index
    %c0_62 = arith.constant 0 : index
    %c0_63 = arith.constant 0 : index
    %195 = vector.load %arg9[%c5, %c0_62, %c0_63] : memref<8x8x128xf32, #tpu.memory_space<vmem>>, vector<1x8x128xf32>
    %196 = vector.shape_cast %195 : vector<1x8x128xf32> to vector<8x128xf32>
    %197 = vector.shape_cast %194 : vector<8x128xf32> to vector<1x8x128xf32>
    tpu.vector_store %arg9[%c5, %c0_62, %c0_63], %197 {strides = array<i32>} : memref<8x8x128xf32, #tpu.memory_space<vmem>>, vector<1x8x128xf32>,
    %198 = vector.broadcast %185 : vector<8x1xf32> to vector<8x128xf32>
    %199 = arith.cmpf oeq, %183, %198 : vector<8x128xf32>
    %c128_i32_64 = arith.constant 128 : i32
    %200 = vector.broadcast %c128_i32_64 : i32 to vector<8x128xi32>
    %201 = arith.select %199, %8, %200 : vector<8x128xi1>, vector<8x128xi32>
    %cst_65 = arith.constant dense<2147483647> : vector<8xi32>
    %202 = vector.multi_reduction <minsi>, %201, %cst_65 [1] : vector<8x128xi32> to vector<8xi32>
    %203 = vector.shape_cast %202 : vector<8xi32> to vector<8x1xi32>
    %204 = vector.broadcast %203 : vector<8x1xi32> to vector<8x128xi32>
    %205 = arith.cmpi eq, %8, %204 : vector<8x128xi32>
    %206 = arith.extui %205 : vector<8x128xi1> to vector<8x128xi32>
    %207 = arith.sitofp %206 : vector<8x128xi32> to vector<8x128xf32>
    %cst_66 = arith.constant dense<0.000000e+00> : vector<8x32xf32>
    %208 = tpu.matmul %207, %5, %cst_66 {dimension_numbers = #tpu.dot_dimension_numbers<[1], [0], [0], [1], [0, 0, 1, 1], [], []>} : vector<8x128xf32>, vector<128x32xf32>, vector<8x32xf32> -> vector<8x32xf32>
    %cst_67 = arith.constant dense<0.000000e+00> : vector<8x32xf32>
    %209 = tpu.matmul %180, %3, %cst_67 {dimension_numbers = #tpu.dot_dimension_numbers<[1], [0], [0], [1], [0, 0, 1, 1], [], []>} : vector<8x32xf32>, vector<32x32xf32>, vector<8x32xf32> -> vector<8x32xf32>
    %210 = arith.addf %208, %209 : vector<8x32xf32>
    %211 = vector.broadcast %6 : vector<1x32xf32> to vector<8x32xf32>
    %212 = arith.addf %210, %211 : vector<8x32xf32>
    %213 = math.tanh %212 : vector<8x32xf32>
    %cst_68 = arith.constant dense<0.000000e+00> : vector<8x128xf32>
    %214 = tpu.matmul %213, %4, %cst_68 {dimension_numbers = #tpu.dot_dimension_numbers<[1], [0], [0], [1], [0, 0, 1, 1], [], []>} : vector<8x32xf32>, vector<32x128xf32>, vector<8x128xf32> -> vector<8x128xf32>
    %215 = vector.broadcast %7 : vector<1x128xf32> to vector<8x128xf32>
    %216 = arith.addf %214, %215 : vector<8x128xf32>
    %cst_69 = arith.constant dense<0xFF800000> : vector<8xf32>
    %217 = vector.multi_reduction <maximumf>, %216, %cst_69 [1] : vector<8x128xf32> to vector<8xf32>
    %218 = vector.shape_cast %217 : vector<8xf32> to vector<8x1xf32>
    %219 = vector.broadcast %218 : vector<8x1xf32> to vector<8x128xf32>
    %220 = arith.subf %216, %219 : vector<8x128xf32>
    %221 = math.exp %220 : vector<8x128xf32>
    %cst_70 = arith.constant dense<0.000000e+00> : vector<8xf32>
    %222 = vector.multi_reduction <add>, %221, %cst_70 [1] : vector<8x128xf32> to vector<8xf32>
    %223 = vector.shape_cast %222 : vector<8xf32> to vector<8x1xf32>
    %224 = math.log %223 : vector<8x1xf32>
    %225 = arith.addf %218, %224 : vector<8x1xf32>
    %226 = vector.broadcast %225 : vector<8x1xf32> to vector<8x128xf32>
    %227 = arith.subf %216, %226 : vector<8x128xf32>
    %c6 = arith.constant 6 : index
    %c0_71 = arith.constant 0 : index
    %c0_72 = arith.constant 0 : index
    %228 = vector.load %arg9[%c6, %c0_71, %c0_72] : memref<8x8x128xf32, #tpu.memory_space<vmem>>, vector<1x8x128xf32>
    %229 = vector.shape_cast %228 : vector<1x8x128xf32> to vector<8x128xf32>
    %230 = vector.shape_cast %227 : vector<8x128xf32> to vector<1x8x128xf32>
    tpu.vector_store %arg9[%c6, %c0_71, %c0_72], %230 {strides = array<i32>} : memref<8x8x128xf32, #tpu.memory_space<vmem>>, vector<1x8x128xf32>,
    %231 = vector.broadcast %218 : vector<8x1xf32> to vector<8x128xf32>
    %232 = arith.cmpf oeq, %216, %231 : vector<8x128xf32>
    %c128_i32_73 = arith.constant 128 : i32
    %233 = vector.broadcast %c128_i32_73 : i32 to vector<8x128xi32>
    %234 = arith.select %232, %8, %233 : vector<8x128xi1>, vector<8x128xi32>
    %cst_74 = arith.constant dense<2147483647> : vector<8xi32>
    %235 = vector.multi_reduction <minsi>, %234, %cst_74 [1] : vector<8x128xi32> to vector<8xi32>
    %236 = vector.shape_cast %235 : vector<8xi32> to vector<8x1xi32>
    %237 = vector.broadcast %236 : vector<8x1xi32> to vector<8x128xi32>
    %238 = arith.cmpi eq, %8, %237 : vector<8x128xi32>
    %239 = arith.extui %238 : vector<8x128xi1> to vector<8x128xi32>
    %240 = arith.sitofp %239 : vector<8x128xi32> to vector<8x128xf32>
    %cst_75 = arith.constant dense<0.000000e+00> : vector<8x32xf32>
    %241 = tpu.matmul %240, %5, %cst_75 {dimension_numbers = #tpu.dot_dimension_numbers<[1], [0], [0], [1], [0, 0, 1, 1], [], []>} : vector<8x128xf32>, vector<128x32xf32>, vector<8x32xf32> -> vector<8x32xf32>
    %cst_76 = arith.constant dense<0.000000e+00> : vector<8x32xf32>
    %242 = tpu.matmul %213, %3, %cst_76 {dimension_numbers = #tpu.dot_dimension_numbers<[1], [0], [0], [1], [0, 0, 1, 1], [], []>} : vector<8x32xf32>, vector<32x32xf32>, vector<8x32xf32> -> vector<8x32xf32>
    %243 = arith.addf %241, %242 : vector<8x32xf32>
    %244 = vector.broadcast %6 : vector<1x32xf32> to vector<8x32xf32>
    %245 = arith.addf %243, %244 : vector<8x32xf32>
    %246 = math.tanh %245 : vector<8x32xf32>
    %cst_77 = arith.constant dense<0.000000e+00> : vector<8x128xf32>
    %247 = tpu.matmul %246, %4, %cst_77 {dimension_numbers = #tpu.dot_dimension_numbers<[1], [0], [0], [1], [0, 0, 1, 1], [], []>} : vector<8x32xf32>, vector<32x128xf32>, vector<8x128xf32> -> vector<8x128xf32>
    %248 = vector.broadcast %7 : vector<1x128xf32> to vector<8x128xf32>
    %249 = arith.addf %247, %248 : vector<8x128xf32>
    %cst_78 = arith.constant dense<0xFF800000> : vector<8xf32>
    %250 = vector.multi_reduction <maximumf>, %249, %cst_78 [1] : vector<8x128xf32> to vector<8xf32>
    %251 = vector.shape_cast %250 : vector<8xf32> to vector<8x1xf32>
    %252 = vector.broadcast %251 : vector<8x1xf32> to vector<8x128xf32>
    %253 = arith.subf %249, %252 : vector<8x128xf32>
    %254 = math.exp %253 : vector<8x128xf32>
    %cst_79 = arith.constant dense<0.000000e+00> : vector<8xf32>
    %255 = vector.multi_reduction <add>, %254, %cst_79 [1] : vector<8x128xf32> to vector<8xf32>
    %256 = vector.shape_cast %255 : vector<8xf32> to vector<8x1xf32>
    %257 = math.log %256 : vector<8x1xf32>
    %258 = arith.addf %251, %257 : vector<8x1xf32>
    %259 = vector.broadcast %258 : vector<8x1xf32> to vector<8x128xf32>
    %260 = arith.subf %249, %259 : vector<8x128xf32>
    %c7 = arith.constant 7 : index
    %c0_80 = arith.constant 0 : index
    %c0_81 = arith.constant 0 : index
    %261 = vector.load %arg9[%c7, %c0_80, %c0_81] : memref<8x8x128xf32, #tpu.memory_space<vmem>>, vector<1x8x128xf32>
    %262 = vector.shape_cast %261 : vector<1x8x128xf32> to vector<8x128xf32>
    %263 = vector.shape_cast %260 : vector<8x128xf32> to vector<1x8x128xf32>
    tpu.vector_store %arg9[%c7, %c0_80, %c0_81], %263 {strides = array<i32>} : memref<8x8x128xf32, #tpu.memory_space<vmem>>, vector<1x8x128xf32>,
    %264 = vector.broadcast %251 : vector<8x1xf32> to vector<8x128xf32>
    %265 = arith.cmpf oeq, %249, %264 : vector<8x128xf32>
    %c128_i32_82 = arith.constant 128 : i32
    %266 = vector.broadcast %c128_i32_82 : i32 to vector<8x128xi32>
    %267 = arith.select %265, %8, %266 : vector<8x128xi1>, vector<8x128xi32>
    %cst_83 = arith.constant dense<2147483647> : vector<8xi32>
    %268 = vector.multi_reduction <minsi>, %267, %cst_83 [1] : vector<8x128xi32> to vector<8xi32>
    %269 = vector.shape_cast %268 : vector<8xi32> to vector<8x1xi32>
    %270 = vector.broadcast %269 : vector<8x1xi32> to vector<8x128xi32>
    %271 = arith.cmpi eq, %8, %270 : vector<8x128xi32>
    %272 = arith.extui %271 : vector<8x128xi1> to vector<8x128xi32>
    %273 = arith.sitofp %272 : vector<8x128xi32> to vector<8x128xf32>
    %cst_84 = arith.constant dense<0.000000e+00> : vector<8x32xf32>
    %274 = tpu.matmul %273, %5, %cst_84 {dimension_numbers = #tpu.dot_dimension_numbers<[1], [0], [0], [1], [0, 0, 1, 1], [], []>} : vector<8x128xf32>, vector<128x32xf32>, vector<8x32xf32> -> vector<8x32xf32>
    %c0_85 = arith.constant 0 : index
    %c0_86 = arith.constant 0 : index
    %275 = vector.load %arg10[%c0_85, %c0_86] : memref<8x32xf32, #tpu.memory_space<vmem>>, vector<8x32xf32>
    tpu.vector_store %arg10[%c0_85, %c0_86], %274 {strides = array<i32>} : memref<8x32xf32, #tpu.memory_space<vmem>>, vector<8x32xf32>,
    %c0_87 = arith.constant 0 : index
    %c0_88 = arith.constant 0 : index
    %276 = vector.load %arg11[%c0_87, %c0_88] : memref<8x32xf32, #tpu.memory_space<vmem>>, vector<8x32xf32>
    tpu.vector_store %arg11[%c0_87, %c0_88], %246 {strides = array<i32>} : memref<8x32xf32, #tpu.memory_space<vmem>>, vector<8x32xf32>,
    return
  }
  func.func @transform_0(%arg0: i32) -> (i32, i32, i32) {
    %c0_i32 = arith.constant 0 : i32
    %c0_i32_0 = arith.constant 0 : i32
    %c0_i32_1 = arith.constant 0 : i32
    %c0_i32_2 = arith.constant 0 : i32
    return %c0_i32, %c0_i32_0, %c0_i32_1 : i32, i32, i32
  }
  func.func @transform_1(%arg0: i32) -> (i32, i32) {
    %c0_i32 = arith.constant 0 : i32
    %c0_i32_0 = arith.constant 0 : i32
    %c0_i32_1 = arith.constant 0 : i32
    return %c0_i32, %c0_i32_0 : i32, i32
  }
  func.func @transform_2(%arg0: i32) -> (i32, i32) {
    %c0_i32 = arith.constant 0 : i32
    %c0_i32_0 = arith.constant 0 : i32
    %c0_i32_1 = arith.constant 0 : i32
    return %c0_i32, %c0_i32_0 : i32, i32
  }
  func.func @transform_3(%arg0: i32) -> (i32, i32) {
    %c0_i32 = arith.constant 0 : i32
    %c0_i32_0 = arith.constant 0 : i32
    %c0_i32_1 = arith.constant 0 : i32
    return %c0_i32, %c0_i32_0 : i32, i32
  }
  func.func @transform_4(%arg0: i32) -> (i32, i32) {
    %c0_i32 = arith.constant 0 : i32
    %c0_i32_0 = arith.constant 0 : i32
    %c0_i32_1 = arith.constant 0 : i32
    return %c0_i32, %c0_i32_0 : i32, i32
  }
  func.func @transform_5(%arg0: i32) -> (i32, i32) {
    %c0_i32 = arith.constant 0 : i32
    %c0_i32_0 = arith.constant 0 : i32
    %c0_i32_1 = arith.constant 0 : i32
    return %c0_i32, %c0_i32_0 : i32, i32
  }
  func.func @transform_6(%arg0: i32) -> (i32, i32) {
    %c0_i32 = arith.constant 0 : i32
    %c0_i32_0 = arith.constant 0 : i32
    %c0_i32_1 = arith.constant 0 : i32
    return %c0_i32, %c0_i32_0 : i32, i32
  }
  func.func @transform_7(%arg0: i32) -> (i32, i32) {
    %c0_i32 = arith.constant 0 : i32
    %c0_i32_0 = arith.constant 0 : i32
    %c0_i32_1 = arith.constant 0 : i32
    return %c0_i32, %c0_i32_0 : i32, i32
  }
  func.func @transform_8(%arg0: i32) -> (i32, i32, i32) {
    %c0_i32 = arith.constant 0 : i32
    %c0_i32_0 = arith.constant 0 : i32
    %c0_i32_1 = arith.constant 0 : i32
    return %arg0, %c0_i32, %c0_i32_0 : i32, i32, i32
  }
}

</mosaic_0001>

<bundles_post_ra>
// kernel: tpu_custom_call.1
= control target key start
LH: loop header
LB: loop body
LE: loop exit
PB: predicated region body
PF: predicated region fallthrough
CT: control target
= control target key end

     0   :  { %13 = vsyncpa [#allocation5], 0  ;;  %s4662_s0 = inlined_call_operand.vmem [shape: f32[8,8,32], index: 0, kind: input, shape index: {}]   ;;  %s4663_s1 = inlined_call_operand.hbm [shape: f32[8,32], index: 1, kind: input, shape index: {}]   ;;  %s4664_s2 = inlined_call_operand.vmem [shape: f32[32,32], index: 2, kind: input, shape index: {}]   ;;  %s4665_s3 = inlined_call_operand.vmem [shape: f32[32,32], index: 3, kind: input, shape index: {}]   ;;  %s4666_s4 = inlined_call_operand.vmem [shape: f32[128,32], index: 4, kind: input, shape index: {}]   ;;  %s4667_s5 = inlined_call_operand.vmem [shape: f32[1,32], index: 5, kind: input, shape index: {}]   ;;  %s4668_s6 = inlined_call_operand.vmem [shape: f32[32,128], index: 6, kind: input, shape index: {}]   ;;  %s4669_s7 = inlined_call_operand.vmem [shape: f32[1,128], index: 7, kind: input, shape index: {}]   ;;  %s4670_s8 = inlined_call_operand.hbm [shape: f32[8,8,128], index: 8, kind: output, shape index: {}]  }
   0x1   :  { %14 = vsyncpa [#allocation6], 0  ;;  %s3699_s27 = smov [#allocation4]  }
   0x2   :  { %s23_s28 = sshll.u32 %s3699_s27, 4  ;;  %s24_s28 = int_to_ptr.vmem [resolvable:$true] %s23_s28 }
   0x3   :  { %s3663_s29 = scalar_lea.vmem %s24_s28, 128  ;;  %p3668_p1 = scmp.lt.s32.totalorder %s24_s28, %s24_s28 }
   0x4   :  { %p3664_p0 = scmp.ne.s32.totalorder %s24_s28, %s3663_s29  ;;  %p3669_p2 = scmp.lt.s32.totalorder %s3663_s29, %s3663_s29 }
   0x6   :  { %p3670_p3 = por %p3669_p2, %p3668_p1 }
   0x8   :  { %p3671_p4 = pnand %p3670_p3, %p3664_p0 }
   0xa   :  { %3674 = shalt.err (!%p3671_p4)
}
   0xb   :  { %26 = dma.hbm_to_vmem [thread:$0]  %s4663_s1, 128, %s24_s28, [#allocation5]  }
   0xc   :  { %3695 = dma.done.wait [#allocation5], 128  }
   0xd   :  { %3696 = vsyncadd [#allocation5], 4294967168  ;;  %v3700_v0 = vmov 0.0   ;;  %vm3701_vm0 = vmmov 0   ;;  %v3763_v1 = vld [vmem:[%s4664_s2 + $0x18] sm:$0xff]  ;;  %v3768_v2 = vld [vmem:[%s4664_s2 + $0x10] sm:$0xff] }
   0xe   :  { %3014 = vmatprep.subr.mxu1 %v3700_v0  ;;  %3022 = vmatprep.mubr.msk.f32.mxu1 %vm3701_vm0, %v3700_v0  ;;  %v3776_v3 = vld [vmem:[%s4664_s2 + $0x8] sm:$0xff]  ;;  %v3785_v4 = vld [vmem:[%s4664_s2] sm:$0xff]  ;;  %vm51_vm1 = vcmask 261120   ;;  %v2712_v15 = vld [vmem:[%s4662_s0 + $0x10] sm:$0xff] }
   0xf   :  { %3036 = vmatprep.subr.mxu0 %v3700_v0  ;;  %3044 = vmatprep.mubr.msk.f32.mxu0 %vm3701_vm0, %v3700_v0  ;;  %v50_v5 = vld [vmem:[%s4662_s0] sm:$0xff]  ;;  %v2710_v10 = vld [vmem:[%s4662_s0 + $0x8] sm:$0xff]  ;;  %v2714_v20 = vld [vmem:[%s4662_s0 + $0x18] sm:$0xff] }
  0x10   :  { %3015 = vmatpush3.msra.mxu1 %v3763_v1  ;;  %3037 = vmatpush3.msra.mxu0 %v3763_v1  ;;  %v2716_v25 = vld [vmem:[%s4662_s0 + $0x20] sm:$0xff]  ;;  %v2718_v30 = vld [vmem:[%s4662_s0 + $0x28] sm:$0xff]  ;;  %v2720_v35 = vld [vmem:[%s4662_s0 + $0x30] sm:$0xff] }
  0x11   :  { %3016 = vmatprep.subr.mxu1 %v3700_v0  ;;  %3038 = vmatprep.subr.mxu0 %v3700_v0  ;;  %v3892_v40 = vld [vmem:[%s4665_s3 + $0x18] sm:$0xff]  ;;  %v3897_v41 = vld [vmem:[%s4665_s3 + $0x10] sm:$0xff]  ;;  %v3904_v42 = vld [vmem:[%s4665_s3 + $0x8] sm:$0xff] }
  0x12   :  { %3017 = vmatpush3.msra.mxu1 %v3768_v2  ;;  %3039 = vmatpush3.msra.mxu0 %v3768_v2  ;;  %v3911_v43 = vld [vmem:[%s4665_s3] sm:$0xff]  ;;  %v667_v44 = vld [vmem:[#allocation4] sm:$0xff]  ;;  %v2722_v45 = vld [vmem:[%s4662_s0 + $0x38] sm:$0xff] }
  0x13   :  { %3018 = vmatprep.subr.mxu1 %v3700_v0  ;;  %3040 = vmatprep.subr.mxu0 %v3700_v0  ;;  %668 = vst.msk [vmem:[#allocation2] sm:$0xff] %vm51_vm1, %v667_v44  ;;  %v3936_v51 = vld [vmem:[%s4668_s6 + $0x18] sm:$0xff]  ;;  %v3941_v52 = vld [vmem:[%s4668_s6 + $0x10] sm:$0xff]  ;;  %v3948_v53 = vld [vmem:[%s4668_s6 + $0x8] sm:$0xff] }
  0x14   :  { %3019 = vmatpush3.msra.mxu1 %v3776_v3  ;;  %3041 = vmatpush3.msra.mxu0 %v3776_v3  ;;  %v3955_v54 = vld [vmem:[%s4668_s6] sm:$0xff] }
  0x15   :  { %3020 = vmatprep.subr.mxu1 %v3700_v0  ;;  %3042 = vmatprep.subr.mxu0 %v3700_v0  ;;  %v3964_v56 = vld [vmem:[%s4667_s5] ss:$0 sm:$0xff] }
  0x16   :  { %3021 = vmatpush3.msra.mxu1 %v3785_v4  ;;  %3043 = vmatpush3.msra.mxu0 %v3785_v4  ;;  %v3984_v62 = vld [vmem:[%s4669_s7] ss:$0 sm:$0xff] }
  0x17   :  { %3023 = vmatmul.mubr.f32.vlgmr.msra.gmra.mxu1 %v3700_v0  ;;  %3025 = vmatprep.subr.mxu1 %v3700_v0 }
  0x18   :  { %3026 = vmatpush3.msra.mxu1 %v3763_v1  ;;  %3033 = vmatprep.mubr.msk.f32.mxu1 %vm3701_vm0, %v3700_v0 }
  0x19   :  { %3027 = vmatprep.subr.mxu1 %v3700_v0  ;;  %3058 = vmatprep.subr.mxu0 %v3700_v0 }
  0x1a   :  { %3028 = vmatpush3.msra.mxu1 %v3768_v2  ;;  %v697_v55 = vld [vmem:[#allocation2] sm:$0xff] }
  0x1b   :  { %3029 = vmatprep.subr.mxu1 %v3700_v0 }
  0x1c   :  { %3030 = vmatpush3.msra.mxu1 %v3776_v3 }
  0x1d   :  { %3031 = vmatprep.subr.mxu1 %v3700_v0 }
  0x1e   :  { %3032 = vmatpush3.msra.mxu1 %v3785_v4 }
  0x1f   :  { %3047 = vmatprep.subr.mxu1 %v3700_v0 }
  0xd7   :  { %v121_v6 = vpop.f32.mrf.mxu1 }
  0xd8   :  { %v125_v7 = vadd.f32 %v121_v6, %v50_v5  ;;  %v695_v5 = vlaneseq }
  0xd9   :  { %v3024_v8 = vpop.f32.mrf.mxu1 }
  0xda   :  { %3565 = vtanh.f32 %v125_v7  ;;  %v3992_v6 = vand.u32 127, %v695_v5 }
  0xe7   :  { %v3566_v9 = vpop.eup %3565 }
  0xe8   :  { %3034 = vmatmul.mubr.msk.f32.vlgmr.msra.gmra.mxu1 %vm51_vm1, %v3566_v9 }
  0xe9   :  { %3048 = vmatpush3.msra.mxu1 %v3763_v1  ;;  %3055 = vmatprep.mubr.msk.f32.mxu1 %vm3701_vm0, %v3700_v0 }
  0xea   :  { %3049 = vmatprep.subr.mxu1 %v3700_v0 }
  0xeb   :  { %3050 = vmatpush3.msra.mxu1 %v3768_v2 }
  0xec   :  { %3051 = vmatprep.subr.mxu1 %v3700_v0 }
  0xed   :  { %3052 = vmatpush3.msra.mxu1 %v3776_v3 }
  0xee   :  { %3053 = vmatprep.subr.mxu1 %v3700_v0 }
  0xef   :  { %3054 = vmatpush3.msra.mxu1 %v3785_v4 }
  0xf0   :  { %3069 = vmatprep.subr.mxu1 %v3700_v0 }
 0x1a8   :  { %v198_v11 = vpop.f32.mrf.mxu1 }
 0x1a9   :  { %v202_v12 = vadd.f32 %v2710_v10, %v198_v11  ;;  %v4002_v11 = vld [vmem:[%s4666_s4 + $0x78] sm:$0xff] }
 0x1aa   :  { %v3035_v13 = vpop.f32.mrf.mxu1 }
 0x1ab   :  { %3567 = vtanh.f32 %v202_v12  ;;  %v4007_v12 = vld [vmem:[%s4666_s4 + $0x70] sm:$0xff]  ;;  %v4014_v13 = vld [vmem:[%s4666_s4 + $0x68] sm:$0xff] }
 0x1b8   :  { %v3568_v14 = vpop.eup %3567 }
 0x1b9   :  { %3045 = vmatmul.mubr.msk.f32.vlgmr.msra.gmra.mxu0 %vm51_vm1, %v3568_v14  ;;  %v4021_v14 = vld [vmem:[%s4666_s4 + $0x60] sm:$0xff] }
 0x1ba   :  { %3059 = vmatpush3.msra.mxu0 %v3763_v1  ;;  %3066 = vmatprep.mubr.msk.f32.mxu0 %vm3701_vm0, %v3700_v0 }
 0x1bb   :  { %3060 = vmatprep.subr.mxu0 %v3700_v0 }
 0x1bc   :  { %3061 = vmatpush3.msra.mxu0 %v3768_v2 }
 0x1bd   :  { %3062 = vmatprep.subr.mxu0 %v3700_v0 }
 0x1be   :  { %3063 = vmatpush3.msra.mxu0 %v3776_v3 }
 0x1bf   :  { %3064 = vmatprep.subr.mxu0 %v3700_v0 }
 0x1c0   :  { %3065 = vmatpush3.msra.mxu0 %v3785_v4 }
 0x1c1   :  { %3080 = vmatprep.subr.mxu0 %v3700_v0 }
 0x279   :  { %v275_v16 = vpop.f32.mrf.mxu0 }
 0x27a   :  { %v279_v17 = vadd.f32 %v2712_v15, %v275_v16  ;;  %v4028_v15 = vld [vmem:[%s4666_s4 + $0x58] sm:$0xff]  ;;  %v4035_v16 = vld [vmem:[%s4666_s4 + $0x50] sm:$0xff] }
 0x27b   :  { %v3046_v18 = vpop.f32.mrf.mxu0 }
 0x27c   :  { %3569 = vtanh.f32 %v279_v17  ;;  %v4042_v17 = vld [vmem:[%s4666_s4 + $0x48] sm:$0xff]  ;;  %v4049_v18 = vld [vmem:[%s4666_s4 + $0x40] sm:$0xff] }
 0x289   :  { %v3570_v19 = vpop.eup %3569 }
 0x28a   :  { %3056 = vmatmul.mubr.msk.f32.vlgmr.msra.gmra.mxu1 %vm51_vm1, %v3570_v19  ;;  %v4056_v19 = vld [vmem:[%s4666_s4 + $0x38] sm:$0xff] }
 0x28b   :  { %3070 = vmatpush3.msra.mxu1 %v3763_v1  ;;  %3077 = vmatprep.mubr.msk.f32.mxu1 %vm3701_vm0, %v3700_v0 }
 0x28c   :  { %3071 = vmatprep.subr.mxu1 %v3700_v0 }
 0x28d   :  { %3072 = vmatpush3.msra.mxu1 %v3768_v2 }
 0x28e   :  { %3073 = vmatprep.subr.mxu1 %v3700_v0 }
 0x28f   :  { %3074 = vmatpush3.msra.mxu1 %v3776_v3 }
 0x290   :  { %3075 = vmatprep.subr.mxu1 %v3700_v0 }
 0x291   :  { %3076 = vmatpush3.msra.mxu1 %v3785_v4 }
 0x292   :  { %3091 = vmatprep.subr.mxu1 %v3700_v0 }
 0x34a   :  { %v352_v21 = vpop.f32.mrf.mxu1 }
 0x34b   :  { %v356_v22 = vadd.f32 %v2714_v20, %v352_v21  ;;  %v4063_v20 = vld [vmem:[%s4666_s4 + $0x30] sm:$0xff]  ;;  %v4070_v21 = vld [vmem:[%s4666_s4 + $0x28] sm:$0xff] }
 0x34c   :  { %v3057_v23 = vpop.f32.mrf.mxu1 }
 0x34d   :  { %3571 = vtanh.f32 %v356_v22  ;;  %v4077_v22 = vld [vmem:[%s4666_s4 + $0x20] sm:$0xff]  ;;  %v4084_v23 = vld [vmem:[%s4666_s4 + $0x18] sm:$0xff] }
 0x35a   :  { %v3572_v24 = vpop.eup %3571 }
 0x35b   :  { %3067 = vmatmul.mubr.msk.f32.vlgmr.msra.gmra.mxu0 %vm51_vm1, %v3572_v24 }
 0x35c   :  { %3081 = vmatpush3.msra.mxu0 %v3763_v1  ;;  %3088 = vmatprep.mubr.msk.f32.mxu0 %vm3701_vm0, %v3700_v0 }
 0x35d   :  { %3082 = vmatprep.subr.mxu0 %v3700_v0 }
 0x35e   :  { %3083 = vmatpush3.msra.mxu0 %v3768_v2 }
 0x35f   :  { %3084 = vmatprep.subr.mxu0 %v3700_v0 }
 0x360   :  { %3085 = vmatpush3.msra.mxu0 %v3776_v3 }
 0x361   :  { %3086 = vmatprep.subr.mxu0 %v3700_v0 }
 0x362   :  { %3087 = vmatpush3.msra.mxu0 %v3785_v4 }
 0x363   :  { %3102 = vmatprep.subr.mxu0 %v3700_v0 }
 0x41b   :  { %v429_v26 = vpop.f32.mrf.mxu0 }
 0x41c   :  { %v433_v27 = vadd.f32 %v2716_v25, %v429_v26 }
 0x41d   :  { %v3068_v28 = vpop.f32.mrf.mxu0 }
 0x41e   :  { %3573 = vtanh.f32 %v433_v27  ;;  %v4093_v28 = vld [vmem:[%s4666_s4 + $0x10] sm:$0xff] }
 0x42b   :  { %v3574_v29 = vpop.eup %3573 }
 0x42c   :  { %3078 = vmatmul.mubr.msk.f32.vlgmr.msra.gmra.mxu1 %vm51_vm1, %v3574_v29  ;;  %v4100_v29 = vld [vmem:[%s4666_s4 + $0x8] sm:$0xff] }
 0x42d   :  { %3092 = vmatpush3.msra.mxu1 %v3763_v1  ;;  %3099 = vmatprep.mubr.msk.f32.mxu1 %vm3701_vm0, %v3700_v0 }
 0x42e   :  { %3093 = vmatprep.subr.mxu1 %v3700_v0 }
 0x42f   :  { %3094 = vmatpush3.msra.mxu1 %v3768_v2 }
 0x430   :  { %3095 = vmatprep.subr.mxu1 %v3700_v0 }
 0x431   :  { %3096 = vmatpush3.msra.mxu1 %v3776_v3 }
 0x432   :  { %3097 = vmatprep.subr.mxu1 %v3700_v0 }
 0x433   :  { %3098 = vmatpush3.msra.mxu1 %v3785_v4 }
 0x434   :  { %3113 = vmatprep.subr.mxu1 %v3700_v0 }
 0x4ec   :  { %v506_v31 = vpop.f32.mrf.mxu1 }
 0x4ed   :  { %v510_v32 = vadd.f32 %v2718_v30, %v506_v31  ;;  %v4107_v30 = vld [vmem:[%s4666_s4] sm:$0xff] }
 0x4ee   :  { %v3079_v33 = vpop.f32.mrf.mxu1 }
 0x4ef   :  { %3575 = vtanh.f32 %v510_v32 }
 0x4fc   :  { %v3576_v34 = vpop.eup %3575 }
 0x4fd   :  { %3089 = vmatmul.mubr.msk.f32.vlgmr.msra.gmra.mxu0 %vm51_vm1, %v3576_v34 }
 0x4fe   :  { %3110 = vmatprep.mubr.msk.f32.mxu0 %vm3701_vm0, %v3700_v0  ;;  %3103 = vmatpush3.msra.mxu0 %v3892_v40 }
 0x4ff   :  { %3104 = vmatprep.subr.mxu0 %v3700_v0 }
 0x500   :  { %3105 = vmatpush3.msra.mxu0 %v3897_v41 }
 0x501   :  { %3106 = vmatprep.subr.mxu0 %v3700_v0 }
 0x502   :  { %3107 = vmatpush3.msra.mxu0 %v3904_v42 }
 0x503   :  { %3108 = vmatprep.subr.mxu0 %v3700_v0 }
 0x504   :  { %3109 = vmatpush3.msra.mxu0 %v3911_v43 }
 0x505   :  { %3124 = vmatprep.subr.mxu0 %v3700_v0 }
 0x5bd   :  { %v583_v36 = vpop.f32.mrf.mxu0 }
 0x5be   :  { %v587_v37 = vadd.f32 %v2720_v35, %v583_v36  ;;  %v3702_v36 = vmov 1.0  }
 0x5bf   :  { %v3090_v38 = vpop.f32.mrf.mxu0 }
 0x5c0   :  { %3577 = vtanh.f32 %v587_v37 }
 0x5cd   :  { %v3578_v39 = vpop.eup %3577 }
 0x5ce   :  { %3100 = vmatmul.mubr.msk.f32.vlgmr.msra.gmra.mxu1 %vm51_vm1, %v3578_v39 }
 0x5cf   :  { %3121 = vmatprep.mubr.msk.f32.mxu1 %vm3701_vm0, %v3700_v0  ;;  %3114 = vmatpush3.msra.mxu1 %v3936_v51 }
 0x5d0   :  { %3115 = vmatprep.subr.mxu1 %v3700_v0 }
 0x5d1   :  { %3116 = vmatpush3.msra.mxu1 %v3941_v52 }
 0x5d2   :  { %3117 = vmatprep.subr.mxu1 %v3700_v0 }
 0x5d3   :  { %3118 = vmatpush3.msra.mxu1 %v3948_v53 }
 0x5d4   :  { %3119 = vmatprep.subr.mxu1 %v3700_v0 }
 0x5d5   :  { %3120 = vmatpush3.msra.mxu1 %v3955_v54 }
 0x5d6   :  { %3135 = vmatprep.subr.mxu1 %v3700_v0 }
 0x68e   :  { %v660_v46 = vpop.f32.mrf.mxu1 }
 0x68f   :  { %v664_v47 = vadd.f32 %v2722_v45, %v660_v46 }
 0x690   :  { %v3101_v48 = vpop.f32.mrf.mxu1 }
 0x691   :  { %3579 = vtanh.f32 %v664_v47 }
 0x69e   :  { %v3580_v49 = vpop.eup %3579 }
 0x69f   :  { %666 = vst.msk [vmem:[#allocation3] sm:$0xff] %vm51_vm1, %v3580_v49 }
 0x6a6   :  { %v698_v50 = vld [vmem:[#allocation3] sm:$0xff] }
 0x6a7   :  { %3111 = vmatmul.mubr.msk.f32.vlgmr.msra.gmra.mxu0 %vm51_vm1, %v698_v50 }
 0x6a8   :  { %3125 = vmatpush3.msra.mxu0 %v3892_v40  ;;  %3132 = vmatprep.mubr.msk.f32.mxu0 %vm3701_vm0, %v3700_v0 }
 0x6a9   :  { %3126 = vmatprep.subr.mxu0 %v3700_v0 }
 0x6aa   :  { %3127 = vmatpush3.msra.mxu0 %v3897_v41 }
 0x6ab   :  { %3128 = vmatprep.subr.mxu0 %v3700_v0 }
 0x6ac   :  { %3129 = vmatpush3.msra.mxu0 %v3904_v42 }
 0x6ad   :  { %3130 = vmatprep.subr.mxu0 %v3700_v0 }
 0x6ae   :  { %3131 = vmatpush3.msra.mxu0 %v3911_v43 }
 0x6af   :  { %3170 = vmatprep.subr.mxu0 %v3700_v0 }
 0x767   :  { %v769_v57 = vpop.f32.mrf.mxu0 }
 0x768   :  { %v773_v58 = vadd.f32 %v769_v57, %v697_v55 }
 0x769   :  { %v3112_v59 = vpop.f32.mrf.mxu0 }
 0x76a   :  { %v780_v60 = vadd.f32 %v3964_v56, %v773_v58 }
 0x76c   :  { %3581 = vtanh.f32 %v780_v60 }
 0x779   :  { %v3582_v61 = vpop.eup %3581 }
 0x77a   :  { %3122 = vmatmul.mubr.msk.f32.vlgmr.msra.gmra.mxu1 %vm51_vm1, %v3582_v61  ;;  %3133 = vmatmul.mubr.msk.f32.vlgmr.msra.gmra.mxu0 %vm51_vm1, %v3582_v61 }
 0x77b   :  { %3167 = vmatprep.mubr.msk.f32.mxu1 %vm3701_vm0, %v3700_v0  ;;  %3171 = vmatpush3.msra.mxu0 %v3936_v51 }
 0x77c   :  { %3172 = vmatprep.subr.mxu0 %v3700_v0  ;;  %3178 = vmatprep.mubr.msk.f32.mxu0 %vm3701_vm0, %v3700_v0 }
 0x77d   :  { %3173 = vmatpush3.msra.mxu0 %v3941_v52  ;;  %3136 = vmatpush3.msra.mxu1 %v4002_v11 }
 0x77e   :  { %3174 = vmatprep.subr.mxu0 %v3700_v0  ;;  %3137 = vmatprep.subr.mxu1 %v3700_v0 }
 0x77f   :  { %3175 = vmatpush3.msra.mxu0 %v3948_v53  ;;  %3138 = vmatpush3.msra.mxu1 %v4007_v12 }
 0x780   :  { %3176 = vmatprep.subr.mxu0 %v3700_v0  ;;  %3139 = vmatprep.subr.mxu1 %v3700_v0 }
 0x781   :  { %3177 = vmatpush3.msra.mxu0 %v3955_v54  ;;  %3140 = vmatpush3.msra.mxu1 %v4014_v13 }
 0x782   :  { %3181 = vmatprep.subr.mxu0 %v3700_v0  ;;  %3141 = vmatprep.subr.mxu1 %v3700_v0 }
 0x783   :  { %3142 = vmatpush3.msra.mxu1 %v4021_v14 }
 0x784   :  { %3143 = vmatprep.subr.mxu1 %v3700_v0 }
 0x785   :  { %3144 = vmatpush3.msra.mxu1 %v4028_v15 }
 0x786   :  { %3145 = vmatprep.subr.mxu1 %v3700_v0 }
 0x787   :  { %3146 = vmatpush3.msra.mxu1 %v4035_v16 }
 0x788   :  { %3147 = vmatprep.subr.mxu1 %v3700_v0 }
 0x789   :  { %3148 = vmatpush3.msra.mxu1 %v4042_v17 }
 0x78a   :  { %3149 = vmatprep.subr.mxu1 %v3700_v0 }
 0x78b   :  { %3150 = vmatpush3.msra.mxu1 %v4049_v18 }
 0x78c   :  { %3151 = vmatprep.subr.mxu1 %v3700_v0 }
 0x78d   :  { %3152 = vmatpush3.msra.mxu1 %v4056_v19 }
 0x78e   :  { %3153 = vmatprep.subr.mxu1 %v3700_v0 }
 0x78f   :  { %3154 = vmatpush3.msra.mxu1 %v4063_v20 }
 0x790   :  { %3155 = vmatprep.subr.mxu1 %v3700_v0 }
 0x791   :  { %3156 = vmatpush3.msra.mxu1 %v4070_v21 }
 0x792   :  { %3157 = vmatprep.subr.mxu1 %v3700_v0 }
 0x793   :  { %3158 = vmatpush3.msra.mxu1 %v4077_v22 }
 0x794   :  { %3159 = vmatprep.subr.mxu1 %v3700_v0 }
 0x795   :  { %3160 = vmatpush3.msra.mxu1 %v4084_v23 }
 0x796   :  { %3161 = vmatprep.subr.mxu1 %v3700_v0 }
 0x797   :  { %3162 = vmatpush3.msra.mxu1 %v4093_v28 }
 0x798   :  { %3163 = vmatprep.subr.mxu1 %v3700_v0 }
 0x799   :  { %3164 = vmatpush3.msra.mxu1 %v4100_v29 }
 0x79a   :  { %3165 = vmatprep.subr.mxu1 %v3700_v0 }
 0x79b   :  { %3166 = vmatpush3.msra.mxu1 %v4107_v30 }
 0x79c   :  { %3227 = vmatprep.subr.mxu1 %v3700_v0 }
 0x83a   :  { %v857_v63 = vpop.f32.mrf.mxu1  ;;  %v3986_v1 = vpop.f32.mrf.mxu0 }
 0x83b   :  { %v3989_v2 = vadd.f32 %v3984_v62, %v857_v63 }
 0x83c   :  { %v3123_v3 = vpop.f32.mrf.mxu1  ;;  %v3134_v4 = vpop.f32.mrf.mxu0 }
 0x83d   :  { %861 = vmax.xlane.f32.xlu0 %v3989_v2 }
 0x8c6   :  { %v3994_v7 = vpop.xlane.xlu0 %861 }
 0x8c7   :  { %vm873_vm2 = vcmp.eq.f32.partialorder %v3989_v2, %v3994_v7 }
 0x8c8   :  { %v874_v8 = vsel %vm873_vm2, %v3992_v6, 128 }
 0x8c9   :  { %v876_v9 = vshra.s32 %v874_v8, 16  ;;  %v875_v24 = vand.u32 65535, %v874_v8 }
 0x8cb   :  { %v878_v10 = vcvt.s32.f32 %v876_v9  ;;  %v877_v26 = vcvt.s32.f32 %v875_v24 }
 0x8cd   :  { %879 = vmin.xlane.f32.xlu0 %v878_v10 }
 0x956   :  { %v880_v25 = vpop.xlane.xlu0 %879 }
 0x957   :  { %vm881_vm3 = vcmp.eq.f32.partialorder %v878_v10, %v880_v25  ;;  %v886_v31 = vcvt.f32.s32 %v880_v25 }
 0x958   :  { %v882_v27 = vsel %vm881_vm3, %v877_v26, inf }
 0x959   :  { %883 = vmin.xlane.f32.xlu1 %v882_v27  ;;  %v887_v33 = vshll.u32 %v886_v31, 16 }
 0x9e2   :  { %v884_v32 = vpop.xlane.xlu1 %883 }
 0x9e3   :  { %v885_v34 = vcvt.f32.s32 %v884_v32 }
 0x9e5   :  { %v888_v35 = vadd.s32 %v887_v33, %v885_v34 }
 0x9e7   :  { %vm889_vm4 = vcmp.eq.s32.totalorder %v3992_v6, %v888_v35 }
 0x9e8   :  { %3168 = vmatmul.mubr.msk.f32.vlgmr.msra.gmra.mxu1 %vm889_vm4, %v3702_v36 }
 0x9e9   :  { %3228 = vmatpush3.msra.mxu1 %v3936_v51  ;;  %3235 = vmatprep.mubr.msk.f32.mxu1 %vm3701_vm0, %v3700_v0 }
 0x9ea   :  { %3229 = vmatprep.subr.mxu1 %v3700_v0 }
 0x9eb   :  { %3230 = vmatpush3.msra.mxu1 %v3941_v52 }
 0x9ec   :  { %3231 = vmatprep.subr.mxu1 %v3700_v0 }
 0x9ed   :  { %3232 = vmatpush3.msra.mxu1 %v3948_v53 }
 0x9ee   :  { %3233 = vmatprep.subr.mxu1 %v3700_v0 }
 0x9ef   :  { %3234 = vmatpush3.msra.mxu1 %v3955_v54 }
 0x9f0   :  { %3238 = vmatprep.subr.mxu1 %v3700_v0 }
 0xaa8   :  { %v1028_v37 = vpop.f32.mrf.mxu1 }
 0xaa9   :  { %v1029_v38 = vadd.f32 %v1028_v37, %v3986_v1 }
 0xaaa   :  { %v3169_v39 = vpop.f32.mrf.mxu1 }
 0xaab   :  { %v1032_v44 = vadd.f32 %v3964_v56, %v1029_v38 }
 0xaad   :  { %3583 = vtanh.f32 %v1032_v44 }
 0xaba   :  { %v3584_v45 = vpop.eup %3583 }
 0xabb   :  { %3179 = vmatmul.mubr.msk.f32.vlgmr.msra.gmra.mxu0 %vm51_vm1, %v3584_v45 }
 0xabc   :  { %3182 = vmatpush3.msra.mxu0 %v3892_v40  ;;  %3189 = vmatprep.mubr.msk.f32.mxu0 %vm3701_vm0, %v3700_v0 }
 0xabd   :  { %3183 = vmatprep.subr.mxu0 %v3700_v0 }
 0xabe   :  { %3184 = vmatpush3.msra.mxu0 %v3897_v41 }
 0xabf   :  { %3185 = vmatprep.subr.mxu0 %v3700_v0 }
 0xac0   :  { %3186 = vmatpush3.msra.mxu0 %v3904_v42 }
 0xac1   :  { %3187 = vmatprep.subr.mxu0 %v3700_v0 }
 0xac2   :  { %3188 = vmatpush3.msra.mxu0 %v3911_v43 }
 0xac3   :  { %3190 = vmatmul.mubr.msk.f32.vlgmr.msra.gmra.mxu0 %vm51_vm1, %v3584_v45  ;;  %3192 = vmatprep.subr.mxu0 %v3700_v0 }
 0xac4   :  { %3193 = vmatpush3.msra.mxu0 %v4002_v11  ;;  %3224 = vmatprep.mubr.msk.f32.mxu0 %vm3701_vm0, %v3700_v0 }
 0xac5   :  { %3194 = vmatprep.subr.mxu0 %v3700_v0 }
 0xac6   :  { %3195 = vmatpush3.msra.mxu0 %v4007_v12 }
 0xac7   :  { %3196 = vmatprep.subr.mxu0 %v3700_v0 }
 0xac8   :  { %3197 = vmatpush3.msra.mxu0 %v4014_v13 }
 0xac9   :  { %3198 = vmatprep.subr.mxu0 %v3700_v0 }
 0xaca   :  { %3199 = vmatpush3.msra.mxu0 %v4021_v14 }
 0xacb   :  { %3200 = vmatprep.subr.mxu0 %v3700_v0 }
 0xacc   :  { %3201 = vmatpush3.msra.mxu0 %v4028_v15 }
 0xacd   :  { %3202 = vmatprep.subr.mxu0 %v3700_v0 }
 0xace   :  { %3203 = vmatpush3.msra.mxu0 %v4035_v16 }
 0xacf   :  { %3204 = vmatprep.subr.mxu0 %v3700_v0 }
 0xad0   :  { %3205 = vmatpush3.msra.mxu0 %v4042_v17 }
 0xad1   :  { %3206 = vmatprep.subr.mxu0 %v3700_v0 }
 0xad2   :  { %3207 = vmatpush3.msra.mxu0 %v4049_v18 }
 0xad3   :  { %3208 = vmatprep.subr.mxu0 %v3700_v0 }
 0xad4   :  { %3209 = vmatpush3.msra.mxu0 %v4056_v19 }
 0xad5   :  { %3210 = vmatprep.subr.mxu0 %v3700_v0 }
 0xad6   :  { %3211 = vmatpush3.msra.mxu0 %v4063_v20 }
 0xad7   :  { %3212 = vmatprep.subr.mxu0 %v3700_v0 }
 0xad8   :  { %3213 = vmatpush3.msra.mxu0 %v4070_v21 }
 0xad9   :  { %3214 = vmatprep.subr.mxu0 %v3700_v0 }
 0xada   :  { %3215 = vmatpush3.msra.mxu0 %v4077_v22 }
 0xadb   :  { %3216 = vmatprep.subr.mxu0 %v3700_v0 }
 0xadc   :  { %3217 = vmatpush3.msra.mxu0 %v4084_v23 }
 0xadd   :  { %3218 = vmatprep.subr.mxu0 %v3700_v0 }
 0xade   :  { %3219 = vmatpush3.msra.mxu0 %v4093_v28 }
 0xadf   :  { %3220 = vmatprep.subr.mxu0 %v3700_v0 }
 0xae0   :  { %3221 = vmatpush3.msra.mxu0 %v4100_v29 }
 0xae1   :  { %3222 = vmatprep.subr.mxu0 %v3700_v0 }
 0xae2   :  { %3223 = vmatpush3.msra.mxu0 %v4107_v30 }
 0xae3   :  { %3284 = vmatprep.subr.mxu0 %v3700_v0 }
 0xb7b   :  { %v1103_v46 = vpop.f32.mrf.mxu0 }
 0xb7c   :  { %v4172_v47 = vadd.f32 %v3984_v62, %v1103_v46 }
 0xb7d   :  { %v3180_v48 = vpop.f32.mrf.mxu0 }
 0xb7e   :  { %1107 = vmax.xlane.f32.xlu1 %v4172_v47 }
 0xb83   :  { %v1205_v49 = vpop.f32.mrf.mxu0 }
 0xb85   :  { %v3191_v50 = vpop.f32.mrf.mxu0 }
 0xc07   :  { %v4175_v55 = vpop.xlane.xlu1 %1107 }
 0xc08   :  { %vm1120_vm5 = vcmp.eq.f32.partialorder %v4172_v47, %v4175_v55 }
 0xc09   :  { %v1121_v57 = vsel %vm1120_vm5, %v3992_v6, 128 }
 0xc0a   :  { %v1123_v58 = vshra.s32 %v1121_v57, 16  ;;  %v1122_v60 = vand.u32 65535, %v1121_v57 }
 0xc0c   :  { %v1125_v59 = vcvt.s32.f32 %v1123_v58  ;;  %v1124_v63 = vcvt.s32.f32 %v1122_v60 }
 0xc0e   :  { %1126 = vmin.xlane.f32.xlu0 %v1125_v59 }
 0xc97   :  { %v1127_v61 = vpop.xlane.xlu0 %1126 }
 0xc98   :  { %vm1128_vm6 = vcmp.eq.f32.partialorder %v1125_v59, %v1127_v61  ;;  %v1133_v3 = vcvt.f32.s32 %v1127_v61 }
 0xc99   :  { %v1129_v1 = vsel %vm1128_vm6, %v1124_v63, inf }
 0xc9a   :  { %1130 = vmin.xlane.f32.xlu1 %v1129_v1  ;;  %v1134_v5 = vshll.u32 %v1133_v3, 16 }
 0xd23   :  { %v1131_v4 = vpop.xlane.xlu1 %1130 }
 0xd24   :  { %v1132_v8 = vcvt.f32.s32 %v1131_v4 }
 0xd26   :  { %v1135_v9 = vadd.s32 %v1134_v5, %v1132_v8 }
 0xd28   :  { %vm1136_vm7 = vcmp.eq.s32.totalorder %v3992_v6, %v1135_v9 }
 0xd29   :  { %3225 = vmatmul.mubr.msk.f32.vlgmr.msra.gmra.mxu0 %vm1136_vm7, %v3702_v36 }
 0xd2a   :  { %3285 = vmatpush3.msra.mxu0 %v3936_v51  ;;  %3292 = vmatprep.mubr.msk.f32.mxu0 %vm3701_vm0, %v3700_v0 }
 0xd2b   :  { %3286 = vmatprep.subr.mxu0 %v3700_v0 }
 0xd2c   :  { %3287 = vmatpush3.msra.mxu0 %v3941_v52 }
 0xd2d   :  { %3288 = vmatprep.subr.mxu0 %v3700_v0 }
 0xd2e   :  { %3289 = vmatpush3.msra.mxu0 %v3948_v53 }
 0xd2f   :  { %3290 = vmatprep.subr.mxu0 %v3700_v0 }
 0xd30   :  { %3291 = vmatpush3.msra.mxu0 %v3955_v54 }
 0xd31   :  { %3295 = vmatprep.subr.mxu0 %v3700_v0 }
 0xde9   :  { %v1275_v10 = vpop.f32.mrf.mxu0 }
 0xdea   :  { %v1276_v24 = vadd.f32 %v1275_v10, %v1205_v49 }
 0xdeb   :  { %v3226_v25 = vpop.f32.mrf.mxu0 }
 0xdec   :  { %v1279_v26 = vadd.f32 %v3964_v56, %v1276_v24 }
 0xdee   :  { %3585 = vtanh.f32 %v1279_v26 }
 0xdfb   :  { %v3586_v27 = vpop.eup %3585 }
 0xdfc   :  { %3236 = vmatmul.mubr.msk.f32.vlgmr.msra.gmra.mxu1 %vm51_vm1, %v3586_v27 }
 0xdfd   :  { %3239 = vmatpush3.msra.mxu1 %v3892_v40  ;;  %3246 = vmatprep.mubr.msk.f32.mxu1 %vm3701_vm0, %v3700_v0 }
 0xdfe   :  { %3240 = vmatprep.subr.mxu1 %v3700_v0 }
 0xdff   :  { %3241 = vmatpush3.msra.mxu1 %v3897_v41 }
 0xe00   :  { %3242 = vmatprep.subr.mxu1 %v3700_v0 }
 0xe01   :  { %3243 = vmatpush3.msra.mxu1 %v3904_v42 }
 0xe02   :  { %3244 = vmatprep.subr.mxu1 %v3700_v0 }
 0xe03   :  { %3245 = vmatpush3.msra.mxu1 %v3911_v43 }
 0xe04   :  { %3247 = vmatmul.mubr.msk.f32.vlgmr.msra.gmra.mxu1 %vm51_vm1, %v3586_v27  ;;  %3249 = vmatprep.subr.mxu1 %v3700_v0 }
 0xe05   :  { %3250 = vmatpush3.msra.mxu1 %v4002_v11  ;;  %3281 = vmatprep.mubr.msk.f32.mxu1 %vm3701_vm0, %v3700_v0 }
 0xe06   :  { %3251 = vmatprep.subr.mxu1 %v3700_v0 }
 0xe07   :  { %3252 = vmatpush3.msra.mxu1 %v4007_v12 }
 0xe08   :  { %3253 = vmatprep.subr.mxu1 %v3700_v0 }
 0xe09   :  { %3254 = vmatpush3.msra.mxu1 %v4014_v13 }
 0xe0a   :  { %3255 = vmatprep.subr.mxu1 %v3700_v0 }
 0xe0b   :  { %3256 = vmatpush3.msra.mxu1 %v4021_v14 }
 0xe0c   :  { %3257 = vmatprep.subr.mxu1 %v3700_v0 }
 0xe0d   :  { %3258 = vmatpush3.msra.mxu1 %v4028_v15 }
 0xe0e   :  { %3259 = vmatprep.subr.mxu1 %v3700_v0 }
 0xe0f   :  { %3260 = vmatpush3.msra.mxu1 %v4035_v16 }
 0xe10   :  { %3261 = vmatprep.subr.mxu1 %v3700_v0 }
 0xe11   :  { %3262 = vmatpush3.msra.mxu1 %v4042_v17 }
 0xe12   :  { %3263 = vmatprep.subr.mxu1 %v3700_v0 }
 0xe13   :  { %3264 = vmatpush3.msra.mxu1 %v4049_v18 }
 0xe14   :  { %3265 = vmatprep.subr.mxu1 %v3700_v0 }
 0xe15   :  { %3266 = vmatpush3.msra.mxu1 %v4056_v19 }
 0xe16   :  { %3267 = vmatprep.subr.mxu1 %v3700_v0 }
 0xe17   :  { %3268 = vmatpush3.msra.mxu1 %v4063_v20 }
 0xe18   :  { %3269 = vmatprep.subr.mxu1 %v3700_v0 }
 0xe19   :  { %3270 = vmatpush3.msra.mxu1 %v4070_v21 }
 0xe1a   :  { %3271 = vmatprep.subr.mxu1 %v3700_v0 }
 0xe1b   :  { %3272 = vmatpush3.msra.mxu1 %v4077_v22 }
 0xe1c   :  { %3273 = vmatprep.subr.mxu1 %v3700_v0 }
 0xe1d   :  { %3274 = vmatpush3.msra.mxu1 %v4084_v23 }
 0xe1e   :  { %3275 = vmatprep.subr.mxu1 %v3700_v0 }
 0xe1f   :  { %3276 = vmatpush3.msra.mxu1 %v4093_v28 }
 0xe20   :  { %3277 = vmatprep.subr.mxu1 %v3700_v0 }
 0xe21   :  { %3278 = vmatpush3.msra.mxu1 %v4100_v29 }
 0xe22   :  { %3279 = vmatprep.subr.mxu1 %v3700_v0 }
 0xe23   :  { %3280 = vmatpush3.msra.mxu1 %v4107_v30 }
 0xe24   :  { %3341 = vmatprep.subr.mxu1 %v3700_v0 }
 0xebc   :  { %v1350_v31 = vpop.f32.mrf.mxu1 }
 0xebd   :  { %v4240_v32 = vadd.f32 %v3984_v62, %v1350_v31 }
 0xebe   :  { %v3237_v33 = vpop.f32.mrf.mxu1 }
 0xebf   :  { %1354 = vmax.xlane.f32.xlu0 %v4240_v32 }
 0xec4   :  { %v1452_v34 = vpop.f32.mrf.mxu1 }
 0xec6   :  { %v3248_v35 = vpop.f32.mrf.mxu1 }
 0xf48   :  { %v4243_v37 = vpop.xlane.xlu0 %1354 }
 0xf49   :  { %vm1367_vm8 = vcmp.eq.f32.partialorder %v4240_v32, %v4243_v37 }
 0xf4a   :  { %v1368_v38 = vsel %vm1367_vm8, %v3992_v6, 128 }
 0xf4b   :  { %v1370_v39 = vshra.s32 %v1368_v38, 16  ;;  %v1369_v45 = vand.u32 65535, %v1368_v38 }
 0xf4d   :  { %v1372_v44 = vcvt.s32.f32 %v1370_v39  ;;  %v1371_v48 = vcvt.s32.f32 %v1369_v45 }
 0xf4f   :  { %1373 = vmin.xlane.f32.xlu1 %v1372_v44 }
 0xfd8   :  { %v1374_v46 = vpop.xlane.xlu1 %1373 }
 0xfd9   :  { %vm1375_vm9 = vcmp.eq.f32.partialorder %v1372_v44, %v1374_v46  ;;  %v1380_v50 = vcvt.f32.s32 %v1374_v46 }
 0xfda   :  { %v1376_v49 = vsel %vm1375_vm9, %v1371_v48, inf }
 0xfdb   :  { %1377 = vmin.xlane.f32.xlu0 %v1376_v49  ;;  %v1381_v58 = vshll.u32 %v1380_v50, 16 }
0x1064   :  { %v1378_v57 = vpop.xlane.xlu0 %1377 }
0x1065   :  { %v1379_v59 = vcvt.f32.s32 %v1378_v57 }
0x1067   :  { %v1382_v60 = vadd.s32 %v1381_v58, %v1379_v59 }
0x1069   :  { %vm1383_vm10 = vcmp.eq.s32.totalorder %v3992_v6, %v1382_v60 }
0x106a   :  { %3282 = vmatmul.mubr.msk.f32.vlgmr.msra.gmra.mxu1 %vm1383_vm10, %v3702_v36 }
0x106b   :  { %3342 = vmatpush3.msra.mxu1 %v3936_v51  ;;  %3349 = vmatprep.mubr.msk.f32.mxu1 %vm3701_vm0, %v3700_v0 }
0x106c   :  { %3343 = vmatprep.subr.mxu1 %v3700_v0 }
0x106d   :  { %3344 = vmatpush3.msra.mxu1 %v3941_v52 }
0x106e   :  { %3345 = vmatprep.subr.mxu1 %v3700_v0 }
0x106f   :  { %3346 = vmatpush3.msra.mxu1 %v3948_v53 }
0x1070   :  { %3347 = vmatprep.subr.mxu1 %v3700_v0 }
0x1071   :  { %3348 = vmatpush3.msra.mxu1 %v3955_v54 }
0x1072   :  { %3352 = vmatprep.subr.mxu1 %v3700_v0 }
0x112a   :  { %v1522_v61 = vpop.f32.mrf.mxu1 }
0x112b   :  { %v1523_v63 = vadd.f32 %v1522_v61, %v1452_v34 }
0x112c   :  { %v3283_v1 = vpop.f32.mrf.mxu1 }
0x112d   :  { %v1526_v3 = vadd.f32 %v3964_v56, %v1523_v63 }
0x112f   :  { %3587 = vtanh.f32 %v1526_v3 }
0x113c   :  { %v3588_v4 = vpop.eup %3587 }
0x113d   :  { %3293 = vmatmul.mubr.msk.f32.vlgmr.msra.gmra.mxu0 %vm51_vm1, %v3588_v4 }
0x113e   :  { %3296 = vmatpush3.msra.mxu0 %v3892_v40  ;;  %3303 = vmatprep.mubr.msk.f32.mxu0 %vm3701_vm0, %v3700_v0 }
0x113f   :  { %3297 = vmatprep.subr.mxu0 %v3700_v0 }
0x1140   :  { %3298 = vmatpush3.msra.mxu0 %v3897_v41 }
0x1141   :  { %3299 = vmatprep.subr.mxu0 %v3700_v0 }
0x1142   :  { %3300 = vmatpush3.msra.mxu0 %v3904_v42 }
0x1143   :  { %3301 = vmatprep.subr.mxu0 %v3700_v0 }
0x1144   :  { %3302 = vmatpush3.msra.mxu0 %v3911_v43 }
0x1145   :  { %3304 = vmatmul.mubr.msk.f32.vlgmr.msra.gmra.mxu0 %vm51_vm1, %v3588_v4  ;;  %3306 = vmatprep.subr.mxu0 %v3700_v0 }
0x1146   :  { %3307 = vmatpush3.msra.mxu0 %v4002_v11  ;;  %3338 = vmatprep.mubr.msk.f32.mxu0 %vm3701_vm0, %v3700_v0 }
0x1147   :  { %3308 = vmatprep.subr.mxu0 %v3700_v0 }
0x1148   :  { %3309 = vmatpush3.msra.mxu0 %v4007_v12 }
0x1149   :  { %3310 = vmatprep.subr.mxu0 %v3700_v0 }
0x114a   :  { %3311 = vmatpush3.msra.mxu0 %v4014_v13 }
0x114b   :  { %3312 = vmatprep.subr.mxu0 %v3700_v0 }
0x114c   :  { %3313 = vmatpush3.msra.mxu0 %v4021_v14 }
0x114d   :  { %3314 = vmatprep.subr.mxu0 %v3700_v0 }
0x114e   :  { %3315 = vmatpush3.msra.mxu0 %v4028_v15 }
0x114f   :  { %3316 = vmatprep.subr.mxu0 %v3700_v0 }
0x1150   :  { %3317 = vmatpush3.msra.mxu0 %v4035_v16 }
0x1151   :  { %3318 = vmatprep.subr.mxu0 %v3700_v0 }
0x1152   :  { %3319 = vmatpush3.msra.mxu0 %v4042_v17 }
0x1153   :  { %3320 = vmatprep.subr.mxu0 %v3700_v0 }
0x1154   :  { %3321 = vmatpush3.msra.mxu0 %v4049_v18 }
0x1155   :  { %3322 = vmatprep.subr.mxu0 %v3700_v0 }
0x1156   :  { %3323 = vmatpush3.msra.mxu0 %v4056_v19 }
0x1157   :  { %3324 = vmatprep.subr.mxu0 %v3700_v0 }
0x1158   :  { %3325 = vmatpush3.msra.mxu0 %v4063_v20 }
0x1159   :  { %3326 = vmatprep.subr.mxu0 %v3700_v0 }
0x115a   :  { %3327 = vmatpush3.msra.mxu0 %v4070_v21 }
0x115b   :  { %3328 = vmatprep.subr.mxu0 %v3700_v0 }
0x115c   :  { %3329 = vmatpush3.msra.mxu0 %v4077_v22 }
0x115d   :  { %3330 = vmatprep.subr.mxu0 %v3700_v0 }
0x115e   :  { %3331 = vmatpush3.msra.mxu0 %v4084_v23 }
0x115f   :  { %3332 = vmatprep.subr.mxu0 %v3700_v0 }
0x1160   :  { %3333 = vmatpush3.msra.mxu0 %v4093_v28 }
0x1161   :  { %3334 = vmatprep.subr.mxu0 %v3700_v0 }
0x1162   :  { %3335 = vmatpush3.msra.mxu0 %v4100_v29 }
0x1163   :  { %3336 = vmatprep.subr.mxu0 %v3700_v0 }
0x1164   :  { %3337 = vmatpush3.msra.mxu0 %v4107_v30 }
0x1165   :  { %3398 = vmatprep.subr.mxu0 %v3700_v0 }
0x11fd   :  { %v1597_v5 = vpop.f32.mrf.mxu0 }
0x11fe   :  { %v4308_v8 = vadd.f32 %v3984_v62, %v1597_v5 }
0x11ff   :  { %v3294_v9 = vpop.f32.mrf.mxu0 }
0x1200   :  { %1601 = vmax.xlane.f32.xlu1 %v4308_v8 }
0x1205   :  { %v1699_v10 = vpop.f32.mrf.mxu0 }
0x1207   :  { %v3305_v24 = vpop.f32.mrf.mxu0 }
0x1289   :  { %v4311_v25 = vpop.xlane.xlu1 %1601 }
0x128a   :  { %vm1614_vm11 = vcmp.eq.f32.partialorder %v4308_v8, %v4311_v25 }
0x128b   :  { %v1615_v26 = vsel %vm1614_vm11, %v3992_v6, 128 }
0x128c   :  { %v1617_v27 = vshra.s32 %v1615_v26, 16  ;;  %v1616_v33 = vand.u32 65535, %v1615_v26 }
0x128e   :  { %v1619_v31 = vcvt.s32.f32 %v1617_v27  ;;  %v1618_v35 = vcvt.s32.f32 %v1616_v33 }
0x1290   :  { %1620 = vmin.xlane.f32.xlu0 %v1619_v31 }
0x1319   :  { %v1621_v34 = vpop.xlane.xlu0 %1620 }
0x131a   :  { %vm1622_vm12 = vcmp.eq.f32.partialorder %v1619_v31, %v1621_v34  ;;  %v1627_v39 = vcvt.f32.s32 %v1621_v34 }
0x131b   :  { %v1623_v38 = vsel %vm1622_vm12, %v1618_v35, inf }
0x131c   :  { %1624 = vmin.xlane.f32.xlu1 %v1623_v38  ;;  %v1628_v45 = vshll.u32 %v1627_v39, 16 }
0x13a5   :  { %v1625_v44 = vpop.xlane.xlu1 %1624 }
0x13a6   :  { %v1626_v46 = vcvt.f32.s32 %v1625_v44 }
0x13a8   :  { %v1629_v48 = vadd.s32 %v1628_v45, %v1626_v46 }
0x13aa   :  { %vm1630_vm13 = vcmp.eq.s32.totalorder %v3992_v6, %v1629_v48 }
0x13ab   :  { %3339 = vmatmul.mubr.msk.f32.vlgmr.msra.gmra.mxu0 %vm1630_vm13, %v3702_v36 }
0x13ac   :  { %3399 = vmatpush3.msra.mxu0 %v3936_v51  ;;  %3406 = vmatprep.mubr.msk.f32.mxu0 %vm3701_vm0, %v3700_v0 }
0x13ad   :  { %3400 = vmatprep.subr.mxu0 %v3700_v0 }
0x13ae   :  { %3401 = vmatpush3.msra.mxu0 %v3941_v52 }
0x13af   :  { %3402 = vmatprep.subr.mxu0 %v3700_v0 }
0x13b0   :  { %3403 = vmatpush3.msra.mxu0 %v3948_v53 }
0x13b1   :  { %3404 = vmatprep.subr.mxu0 %v3700_v0 }
0x13b2   :  { %3405 = vmatpush3.msra.mxu0 %v3955_v54 }
0x13b3   :  { %3409 = vmatprep.subr.mxu0 %v3700_v0 }
0x146b   :  { %v1769_v49 = vpop.f32.mrf.mxu0 }
0x146c   :  { %v1770_v50 = vadd.f32 %v1769_v49, %v1699_v10 }
0x146d   :  { %v3340_v57 = vpop.f32.mrf.mxu0 }
0x146e   :  { %v1773_v58 = vadd.f32 %v3964_v56, %v1770_v50 }
0x1470   :  { %3589 = vtanh.f32 %v1773_v58 }
0x147d   :  { %v3590_v59 = vpop.eup %3589 }
0x147e   :  { %3350 = vmatmul.mubr.msk.f32.vlgmr.msra.gmra.mxu1 %vm51_vm1, %v3590_v59 }
0x147f   :  { %3353 = vmatpush3.msra.mxu1 %v3892_v40  ;;  %3360 = vmatprep.mubr.msk.f32.mxu1 %vm3701_vm0, %v3700_v0 }
0x1480   :  { %3354 = vmatprep.subr.mxu1 %v3700_v0 }
0x1481   :  { %3355 = vmatpush3.msra.mxu1 %v3897_v41 }
0x1482   :  { %3356 = vmatprep.subr.mxu1 %v3700_v0 }
0x1483   :  { %3357 = vmatpush3.msra.mxu1 %v3904_v42 }
0x1484   :  { %3358 = vmatprep.subr.mxu1 %v3700_v0 }
0x1485   :  { %3359 = vmatpush3.msra.mxu1 %v3911_v43 }
0x1486   :  { %3361 = vmatmul.mubr.msk.f32.vlgmr.msra.gmra.mxu1 %vm51_vm1, %v3590_v59  ;;  %3363 = vmatprep.subr.mxu1 %v3700_v0 }
0x1487   :  { %3364 = vmatpush3.msra.mxu1 %v4002_v11  ;;  %3395 = vmatprep.mubr.msk.f32.mxu1 %vm3701_vm0, %v3700_v0 }
0x1488   :  { %3365 = vmatprep.subr.mxu1 %v3700_v0 }
0x1489   :  { %3366 = vmatpush3.msra.mxu1 %v4007_v12 }
0x148a   :  { %3367 = vmatprep.subr.mxu1 %v3700_v0 }
0x148b   :  { %3368 = vmatpush3.msra.mxu1 %v4014_v13 }
0x148c   :  { %3369 = vmatprep.subr.mxu1 %v3700_v0 }
0x148d   :  { %3370 = vmatpush3.msra.mxu1 %v4021_v14 }
0x148e   :  { %3371 = vmatprep.subr.mxu1 %v3700_v0 }
0x148f   :  { %3372 = vmatpush3.msra.mxu1 %v4028_v15 }
0x1490   :  { %3373 = vmatprep.subr.mxu1 %v3700_v0 }
0x1491   :  { %3374 = vmatpush3.msra.mxu1 %v4035_v16 }
0x1492   :  { %3375 = vmatprep.subr.mxu1 %v3700_v0 }
0x1493   :  { %3376 = vmatpush3.msra.mxu1 %v4042_v17 }
0x1494   :  { %3377 = vmatprep.subr.mxu1 %v3700_v0 }
0x1495   :  { %3378 = vmatpush3.msra.mxu1 %v4049_v18 }
0x1496   :  { %3379 = vmatprep.subr.mxu1 %v3700_v0 }
0x1497   :  { %3380 = vmatpush3.msra.mxu1 %v4056_v19 }
0x1498   :  { %3381 = vmatprep.subr.mxu1 %v3700_v0 }
0x1499   :  { %3382 = vmatpush3.msra.mxu1 %v4063_v20 }
0x149a   :  { %3383 = vmatprep.subr.mxu1 %v3700_v0 }
0x149b   :  { %3384 = vmatpush3.msra.mxu1 %v4070_v21 }
0x149c   :  { %3385 = vmatprep.subr.mxu1 %v3700_v0 }
0x149d   :  { %3386 = vmatpush3.msra.mxu1 %v4077_v22 }
0x149e   :  { %3387 = vmatprep.subr.mxu1 %v3700_v0 }
0x149f   :  { %3388 = vmatpush3.msra.mxu1 %v4084_v23 }
0x14a0   :  { %3389 = vmatprep.subr.mxu1 %v3700_v0 }
0x14a1   :  { %3390 = vmatpush3.msra.mxu1 %v4093_v28 }
0x14a2   :  { %3391 = vmatprep.subr.mxu1 %v3700_v0 }
0x14a3   :  { %3392 = vmatpush3.msra.mxu1 %v4100_v29 }
0x14a4   :  { %3393 = vmatprep.subr.mxu1 %v3700_v0 }
0x14a5   :  { %3394 = vmatpush3.msra.mxu1 %v4107_v30 }
0x14a6   :  { %3455 = vmatprep.subr.mxu1 %v3700_v0 }
0x153e   :  { %v1844_v60 = vpop.f32.mrf.mxu1 }
0x153f   :  { %v4376_v61 = vadd.f32 %v3984_v62, %v1844_v60 }
0x1540   :  { %v3351_v63 = vpop.f32.mrf.mxu1 }
0x1541   :  { %1848 = vmax.xlane.f32.xlu0 %v4376_v61 }
0x1546   :  { %v1946_v1 = vpop.f32.mrf.mxu1 }
0x1548   :  { %v3362_v3 = vpop.f32.mrf.mxu1 }
0x15ca   :  { %v4379_v4 = vpop.xlane.xlu0 %1848 }
0x15cb   :  { %vm1861_vm14 = vcmp.eq.f32.partialorder %v4376_v61, %v4379_v4 }
0x15cc   :  { %v1862_v5 = vsel %vm1861_vm14, %v3992_v6, 128 }
0x15cd   :  { %v1864_v9 = vshra.s32 %v1862_v5, 16  ;;  %v1863_v24 = vand.u32 65535, %v1862_v5  ;;  %v3629_v5 = vld [vmem:[%s4668_s6 + $0x18] sm:$0xff] }
0x15cf   :  { %v1866_v10 = vcvt.s32.f32 %v1864_v9  ;;  %v1865_v27 = vcvt.s32.f32 %v1863_v24  ;;  %v3630_v9 = vld [vmem:[%s4668_s6 + $0x10] sm:$0xff]  ;;  %v3632_v24 = vld [vmem:[%s4668_s6] sm:$0xff] }
0x15d1   :  { %1867 = vmin.xlane.f32.xlu1 %v1866_v10 }
0x165a   :  { %v1868_v26 = vpop.xlane.xlu1 %1867 }
0x165b   :  { %vm1869_vm15 = vcmp.eq.f32.partialorder %v1866_v10, %v1868_v26  ;;  %v1874_v33 = vcvt.f32.s32 %v1868_v26  ;;  %v3631_v10 = vld [vmem:[%s4668_s6 + $0x8] sm:$0xff] }
0x165c   :  { %v1870_v31 = vsel %vm1869_vm15, %v1865_v27, inf }
0x165d   :  { %1871 = vmin.xlane.f32.xlu0 %v1870_v31  ;;  %v1875_v35 = vshll.u32 %v1874_v33, 16  ;;  %v4475_v33 = vld [vmem:[%s4667_s5] ss:$0 sm:$0xff] }
0x16e6   :  { %v1872_v34 = vpop.xlane.xlu0 %1871 }
0x16e7   :  { %v1873_v38 = vcvt.f32.s32 %v1872_v34 }
0x16e9   :  { %v1876_v39 = vadd.s32 %v1875_v35, %v1873_v38  ;;  %v3634_v38 = vld [vmem:[%s4665_s3 + $0x18] sm:$0xff] }
0x16eb   :  { %vm1877_vm2 = vcmp.eq.s32.totalorder %v3992_v6, %v1876_v39  ;;  %v3635_v39 = vld [vmem:[%s4665_s3 + $0x10] sm:$0xff] }
0x16ec   :  { %3396 = vmatmul.mubr.msk.f32.vlgmr.msra.gmra.mxu1 %vm1877_vm2, %v3702_v36 }
0x16ed   :  { %3456 = vmatpush3.msra.mxu1 %v3936_v51  ;;  %3463 = vmatprep.mubr.msk.f32.mxu1 %vm3701_vm0, %v3700_v0 }
0x16ee   :  { %3457 = vmatprep.subr.mxu1 %v3700_v0 }
0x16ef   :  { %3458 = vmatpush3.msra.mxu1 %v3941_v52 }
0x16f0   :  { %3459 = vmatprep.subr.mxu1 %v3700_v0 }
0x16f1   :  { %3460 = vmatpush3.msra.mxu1 %v3948_v53 }
0x16f2   :  { %3461 = vmatprep.subr.mxu1 %v3700_v0 }
0x16f3   :  { %3462 = vmatpush3.msra.mxu1 %v3955_v54 }
0x16f4   :  { %3466 = vmatprep.subr.mxu1 %v3700_v0 }
0x17ac   :  { %v2016_v44 = vpop.f32.mrf.mxu1 }
0x17ad   :  { %v2017_v45 = vadd.f32 %v2016_v44, %v1946_v1  ;;  %v3636_v44 = vld [vmem:[%s4665_s3 + $0x8] sm:$0xff] }
0x17ae   :  { %v3397_v51 = vpop.f32.mrf.mxu1 }
0x17af   :  { %v2020_v46 = vadd.f32 %v3964_v56, %v2017_v45  ;;  %v3637_v45 = vld [vmem:[%s4665_s3] sm:$0xff] }
0x17b1   :  { %3591 = vtanh.f32 %v2020_v46 }
0x17be   :  { %v3592_v48 = vpop.eup %3591 }
0x17bf   :  { %3407 = vmatmul.mubr.msk.f32.vlgmr.msra.gmra.mxu0 %vm51_vm1, %v3592_v48 }
0x17c0   :  { %3410 = vmatpush3.msra.mxu0 %v3892_v40  ;;  %3417 = vmatprep.mubr.msk.f32.mxu0 %vm3701_vm0, %v3700_v0 }
0x17c1   :  { %3411 = vmatprep.subr.mxu0 %v3700_v0 }
0x17c2   :  { %3412 = vmatpush3.msra.mxu0 %v3897_v41 }
0x17c3   :  { %3413 = vmatprep.subr.mxu0 %v3700_v0 }
0x17c4   :  { %3414 = vmatpush3.msra.mxu0 %v3904_v42 }
0x17c5   :  { %3415 = vmatprep.subr.mxu0 %v3700_v0 }
0x17c6   :  { %3416 = vmatpush3.msra.mxu0 %v3911_v43 }
0x17c7   :  { %3418 = vmatmul.mubr.msk.f32.vlgmr.msra.gmra.mxu0 %vm51_vm1, %v3592_v48  ;;  %3420 = vmatprep.subr.mxu0 %v3700_v0 }
0x17c8   :  { %3421 = vmatpush3.msra.mxu0 %v4002_v11  ;;  %3452 = vmatprep.mubr.msk.f32.mxu0 %vm3701_vm0, %v3700_v0 }
0x17c9   :  { %3422 = vmatprep.subr.mxu0 %v3700_v0 }
0x17ca   :  { %3423 = vmatpush3.msra.mxu0 %v4007_v12 }
0x17cb   :  { %3424 = vmatprep.subr.mxu0 %v3700_v0 }
0x17cc   :  { %3425 = vmatpush3.msra.mxu0 %v4014_v13 }
0x17cd   :  { %3426 = vmatprep.subr.mxu0 %v3700_v0 }
0x17ce   :  { %3427 = vmatpush3.msra.mxu0 %v4021_v14 }
0x17cf   :  { %3428 = vmatprep.subr.mxu0 %v3700_v0 }
0x17d0   :  { %3429 = vmatpush3.msra.mxu0 %v4028_v15 }
0x17d1   :  { %3430 = vmatprep.subr.mxu0 %v3700_v0 }
0x17d2   :  { %3431 = vmatpush3.msra.mxu0 %v4035_v16 }
0x17d3   :  { %3432 = vmatprep.subr.mxu0 %v3700_v0 }
0x17d4   :  { %3433 = vmatpush3.msra.mxu0 %v4042_v17 }
0x17d5   :  { %3434 = vmatprep.subr.mxu0 %v3700_v0 }
0x17d6   :  { %3435 = vmatpush3.msra.mxu0 %v4049_v18 }
0x17d7   :  { %3436 = vmatprep.subr.mxu0 %v3700_v0 }
0x17d8   :  { %3437 = vmatpush3.msra.mxu0 %v4056_v19 }
0x17d9   :  { %3438 = vmatprep.subr.mxu0 %v3700_v0 }
0x17da   :  { %3439 = vmatpush3.msra.mxu0 %v4063_v20 }
0x17db   :  { %3440 = vmatprep.subr.mxu0 %v3700_v0 }
0x17dc   :  { %3441 = vmatpush3.msra.mxu0 %v4070_v21 }
0x17dd   :  { %3442 = vmatprep.subr.mxu0 %v3700_v0 }
0x17de   :  { %3443 = vmatpush3.msra.mxu0 %v4077_v22 }
0x17df   :  { %3444 = vmatprep.subr.mxu0 %v3700_v0 }
0x17e0   :  { %3445 = vmatpush3.msra.mxu0 %v4084_v23 }
0x17e1   :  { %3446 = vmatprep.subr.mxu0 %v3700_v0 }
0x17e2   :  { %3447 = vmatpush3.msra.mxu0 %v4093_v28 }
0x17e3   :  { %3448 = vmatprep.subr.mxu0 %v3700_v0 }
0x17e4   :  { %3449 = vmatpush3.msra.mxu0 %v4100_v29 }
0x17e5   :  { %3450 = vmatprep.subr.mxu0 %v3700_v0 }
0x17e6   :  { %3451 = vmatpush3.msra.mxu0 %v4107_v30 }
0x17e7   :  { %3512 = vmatprep.subr.mxu0 %v3700_v0 }
0x187f   :  { %v2091_v40 = vpop.f32.mrf.mxu0 }
0x1880   :  { %v4444_v41 = vadd.f32 %v3984_v62, %v2091_v40 }
0x1881   :  { %v3408_v42 = vpop.f32.mrf.mxu0 }
0x1882   :  { %2095 = vmax.xlane.f32.xlu1 %v4444_v41 }
0x1887   :  { %v2193_v43 = vpop.f32.mrf.mxu0 }
0x1889   :  { %v3419_v52 = vpop.f32.mrf.mxu0 }
0x190b   :  { %v4447_v53 = vpop.xlane.xlu1 %2095 }
0x190c   :  { %vm2108_vm3 = vcmp.eq.f32.partialorder %v4444_v41, %v4447_v53 }
0x190d   :  { %v2109_v54 = vsel %vm2108_vm3, %v3992_v6, 128 }
0x190e   :  { %v2111_v56 = vshra.s32 %v2109_v54, 16  ;;  %v2110_v50 = vand.u32 65535, %v2109_v54 }
0x1910   :  { %v2113_v49 = vcvt.s32.f32 %v2111_v56  ;;  %v2112_v58 = vcvt.s32.f32 %v2110_v50  ;;  %v3639_v56 = vld [vmem:[%s4666_s4 + $0x78] sm:$0xff]  ;;  %v3641_v50 = vld [vmem:[%s4666_s4 + $0x68] sm:$0xff] }
0x1912   :  { %2114 = vmin.xlane.f32.xlu0 %v2113_v49 }
0x199b   :  { %v2115_v57 = vpop.xlane.xlu0 %2114 }
0x199c   :  { %vm2116_vm4 = vcmp.eq.f32.partialorder %v2113_v49, %v2115_v57  ;;  %v2121_v59 = vcvt.f32.s32 %v2115_v57  ;;  %v3640_v49 = vld [vmem:[%s4666_s4 + $0x70] sm:$0xff]  ;;  %v3642_v57 = vld [vmem:[%s4666_s4 + $0x60] sm:$0xff] }
0x199d   :  { %v2117_v62 = vsel %vm2116_vm4, %v2112_v58, inf  ;;  %v3643_v58 = vld [vmem:[%s4666_s4 + $0x58] sm:$0xff] }
0x199e   :  { %2118 = vmin.xlane.f32.xlu1 %v2117_v62  ;;  %v2122_v63 = vshll.u32 %v2121_v59, 16  ;;  %v3644_v62 = vld [vmem:[%s4666_s4 + $0x50] sm:$0xff]  ;;  %v3645_v59 = vld [vmem:[%s4666_s4 + $0x48] sm:$0xff] }
0x1a27   :  { %v2119_v60 = vpop.xlane.xlu1 %2118 }
0x1a28   :  { %v2120_v1 = vcvt.f32.s32 %v2119_v60  ;;  %v3646_v60 = vld [vmem:[%s4666_s4 + $0x40] sm:$0xff] }
0x1a2a   :  { %v2123_v3 = vadd.s32 %v2122_v63, %v2120_v1  ;;  %v3647_v63 = vld [vmem:[%s4666_s4 + $0x38] sm:$0xff]  ;;  %v3648_v1 = vld [vmem:[%s4666_s4 + $0x30] sm:$0xff] }
0x1a2c   :  { %vm2124_vm5 = vcmp.eq.s32.totalorder %v3992_v6, %v2123_v3  ;;  %v3649_v3 = vld [vmem:[%s4666_s4 + $0x28] sm:$0xff] }
0x1a2d   :  { %3453 = vmatmul.mubr.msk.f32.vlgmr.msra.gmra.mxu0 %vm2124_vm5, %v3702_v36 }
0x1a2e   :  { %3513 = vmatpush3.msra.mxu0 %v3629_v5  ;;  %3520 = vmatprep.mubr.msk.f32.mxu0 %vm3701_vm0, %v3700_v0  ;;  %v3650_v5 = vld [vmem:[%s4666_s4 + $0x20] sm:$0xff] }
0x1a2f   :  { %3514 = vmatprep.subr.mxu0 %v3700_v0 }
0x1a30   :  { %3515 = vmatpush3.msra.mxu0 %v3630_v9  ;;  %v3651_v9 = vld [vmem:[%s4666_s4 + $0x18] sm:$0xff] }
0x1a31   :  { %3516 = vmatprep.subr.mxu0 %v3700_v0 }
0x1a32   :  { %3517 = vmatpush3.msra.mxu0 %v3631_v10  ;;  %v3652_v10 = vld [vmem:[%s4666_s4 + $0x10] sm:$0xff] }
0x1a33   :  { %3518 = vmatprep.subr.mxu0 %v3700_v0 }
0x1a34   :  { %3519 = vmatpush3.msra.mxu0 %v3632_v24  ;;  %v3653_v24 = vld [vmem:[%s4666_s4 + $0x8] sm:$0xff] }
0x1a35   :  { %3523 = vmatprep.subr.mxu0 %v3700_v0 }
0x1aed   :  { %v2263_v26 = vpop.f32.mrf.mxu0 }
0x1aee   :  { %v2264_v27 = vadd.f32 %v2263_v26, %v2193_v43  ;;  %v3654_v26 = vld [vmem:[%s4666_s4] sm:$0xff]  ;;  %s3703_s4 = smov [#allocation7]  }
0x1aef   :  { %v3454_v31 = vpop.f32.mrf.mxu0  ;;  %s2698_s28 = sshll.u32 %s3703_s4, 4  ;;  %s2699_s28 = int_to_ptr.vmem [resolvable:$true] %s2698_s28 }
0x1af0   :  { %v2267_v34 = vadd.f32 %v4475_v33, %v2264_v27  ;;  %s3675_s29 = scalar_lea.vmem %s2699_s28, 1024  ;;  %p3680_p6 = scmp.lt.s32.totalorder %s2699_s28, %s2699_s28 }
0x1af1   :  { %p3676_p5 = scmp.ne.s32.totalorder %s2699_s28, %s3675_s29  ;;  %p3681_p7 = scmp.lt.s32.totalorder %s3675_s29, %s3675_s29 }
0x1af2   :  { %3593 = vtanh.f32 %v2267_v34  ;;  %v863_v34 = vsub.f32 %v3989_v2, %v3994_v7 }
0x1af3   :  { %p3682_p8 = por %p3681_p7, %p3680_p6 }
0x1af5   :  { %p3683_p9 = pnand %p3682_p8, %p3676_p5 }
0x1aff   :  { %v3594_v35 = vpop.eup %3593 }
0x1b00   :  { %3464 = vmatmul.mubr.msk.f32.vlgmr.msra.gmra.mxu1 %vm51_vm1, %v3594_v35 }
0x1b01   :  { %3467 = vmatpush3.msra.mxu1 %v3634_v38  ;;  %3474 = vmatprep.mubr.msk.f32.mxu1 %vm3701_vm0, %v3700_v0  ;;  %v1356_v38 = vsub.f32 %v4240_v32, %v4243_v37 }
0x1b02   :  { %3468 = vmatprep.subr.mxu1 %v3700_v0 }
0x1b03   :  { %3469 = vmatpush3.msra.mxu1 %v3635_v39  ;;  %v1850_v39 = vsub.f32 %v4376_v61, %v4379_v4 }
0x1b04   :  { %3470 = vmatprep.subr.mxu1 %v3700_v0 }
0x1b05   :  { %3471 = vmatpush3.msra.mxu1 %v3636_v44 }
0x1b06   :  { %3472 = vmatprep.subr.mxu1 %v3700_v0 }
0x1b07   :  { %3473 = vmatpush3.msra.mxu1 %v3637_v45  ;;  %v1851_v45 = vmul.f32 1.442695, %v1850_v39 }
0x1b08   :  { %3475 = vmatmul.mubr.msk.f32.vlgmr.msra.gmra.mxu1 %vm51_vm1, %v3594_v35  ;;  %3477 = vmatprep.subr.mxu1 %v3700_v0  ;;  %v864_v35 = vmul.f32 1.442695, %v863_v34 }
0x1b09   :  { %3478 = vmatpush3.msra.mxu1 %v4002_v11  ;;  %3509 = vmatprep.mubr.msk.f32.mxu1 %vm3701_vm0, %v3700_v0 }
0x1b0a   :  { %3479 = vmatprep.subr.mxu1 %v3700_v0 }
0x1b0b   :  { %3480 = vmatpush3.msra.mxu1 %v4007_v12  ;;  %v4534_v12 = vld [vmem:[%s4669_s7] ss:$0 sm:$0xff] }
0x1b0c   :  { %3481 = vmatprep.subr.mxu1 %v3700_v0 }
0x1b0d   :  { %3482 = vmatpush3.msra.mxu1 %v4014_v13 }
0x1b0e   :  { %3483 = vmatprep.subr.mxu1 %v3700_v0 }
0x1b0f   :  { %3484 = vmatpush3.msra.mxu1 %v4021_v14 }
0x1b10   :  { %3485 = vmatprep.subr.mxu1 %v3700_v0 }
0x1b11   :  { %3486 = vmatpush3.msra.mxu1 %v4028_v15 }
0x1b12   :  { %3487 = vmatprep.subr.mxu1 %v3700_v0 }
0x1b13   :  { %3488 = vmatpush3.msra.mxu1 %v4035_v16 }
0x1b14   :  { %3489 = vmatprep.subr.mxu1 %v3700_v0 }
0x1b15   :  { %3490 = vmatpush3.msra.mxu1 %v4042_v17 }
0x1b16   :  { %3491 = vmatprep.subr.mxu1 %v3700_v0 }
0x1b17   :  { %3492 = vmatpush3.msra.mxu1 %v4049_v18 }
0x1b18   :  { %3493 = vmatprep.subr.mxu1 %v3700_v0 }
0x1b19   :  { %3494 = vmatpush3.msra.mxu1 %v4056_v19 }
0x1b1a   :  { %3495 = vmatprep.subr.mxu1 %v3700_v0 }
0x1b1b   :  { %3496 = vmatpush3.msra.mxu1 %v4063_v20 }
0x1b1c   :  { %3497 = vmatprep.subr.mxu1 %v3700_v0 }
0x1b1d   :  { %3498 = vmatpush3.msra.mxu1 %v4070_v21 }
0x1b1e   :  { %3499 = vmatprep.subr.mxu1 %v3700_v0 }
0x1b1f   :  { %3500 = vmatpush3.msra.mxu1 %v4077_v22 }
0x1b20   :  { %3501 = vmatprep.subr.mxu1 %v3700_v0 }
0x1b21   :  { %3502 = vmatpush3.msra.mxu1 %v4084_v23 }
0x1b22   :  { %3503 = vmatprep.subr.mxu1 %v3700_v0 }
0x1b23   :  { %3504 = vmatpush3.msra.mxu1 %v4093_v28 }
0x1b24   :  { %3505 = vmatprep.subr.mxu1 %v3700_v0 }
0x1b25   :  { %3506 = vmatpush3.msra.mxu1 %v4100_v29 }
0x1b26   :  { %3507 = vmatprep.subr.mxu1 %v3700_v0 }
0x1b27   :  { %3508 = vmatpush3.msra.mxu1 %v4107_v30 }
0x1bc0   :  { %v2338_v11 = vpop.f32.mrf.mxu1 }
0x1bc1   :  { %v4537_v13 = vadd.f32 %v4534_v12, %v2338_v11 }
0x1bc2   :  { %v3465_v14 = vpop.f32.mrf.mxu1 }
0x1bc3   :  { %2342 = vmax.xlane.f32.xlu0 %v4537_v13 }
0x1bc8   :  { %v2440_v15 = vpop.f32.mrf.mxu1 }
0x1bca   :  { %v3476_v16 = vpop.f32.mrf.mxu1 }
0x1c4c   :  { %v4540_v17 = vpop.xlane.xlu0 %2342 }
0x1c4d   :  { %vm2355_vm6 = vcmp.eq.f32.partialorder %v4537_v13, %v4540_v17  ;;  %v2344_v11 = vsub.f32 %v4537_v13, %v4540_v17 }
0x1c4e   :  { %v2356_v18 = vsel %vm2355_vm6, %v3992_v6, 128 }
0x1c4f   :  { %v2358_v19 = vshra.s32 %v2356_v18, 16  ;;  %v2357_v21 = vand.u32 65535, %v2356_v18 }
0x1c51   :  { %v2360_v20 = vcvt.s32.f32 %v2358_v19  ;;  %v2359_v23 = vcvt.s32.f32 %v2357_v21 }
0x1c53   :  { %2361 = vmin.xlane.f32.xlu1 %v2360_v20 }
0x1cdc   :  { %v2362_v22 = vpop.xlane.xlu1 %2361 }
0x1cdd   :  { %vm2363_vm7 = vcmp.eq.f32.partialorder %v2360_v20, %v2362_v22  ;;  %v2368_v29 = vcvt.f32.s32 %v2362_v22  ;;  %v1109_v22 = vsub.f32 %v4172_v47, %v4175_v55 }
0x1cde   :  { %v2364_v28 = vsel %vm2363_vm7, %v2359_v23, inf }
0x1cdf   :  { %2365 = vmin.xlane.f32.xlu0 %v2364_v28  ;;  %v2369_v51 = vshll.u32 %v2368_v29, 16  ;;  %v1110_v23 = vmul.f32 1.442695, %v1109_v22  ;;  %v1603_v28 = vsub.f32 %v4308_v8, %v4311_v25 }
0x1ce1   :  { %v1604_v29 = vmul.f32 1.442695, %v1603_v28 }
0x1d68   :  { %v2366_v30 = vpop.xlane.xlu0 %2365 }
0x1d69   :  { %v2367_v46 = vcvt.f32.s32 %v2366_v30  ;;  %v2097_v30 = vsub.f32 %v4444_v41, %v4447_v53 }
0x1d6b   :  { %v2370_v48 = vadd.s32 %v2369_v51, %v2367_v46 }
0x1d6d   :  { %vm2371_vm8 = vcmp.eq.s32.totalorder %v3992_v6, %v2370_v48  ;;  %v2098_v48 = vmul.f32 1.442695, %v2097_v30 }
0x1d6e   :  { %3510 = vmatmul.mubr.msk.f32.vlgmr.msra.gmra.mxu1 %vm2371_vm8, %v3702_v36 }
0x1e2e   :  { %v2510_v40 = vpop.f32.mrf.mxu1 }
0x1e2f   :  { %v2511_v42 = vadd.f32 %v2510_v40, %v2440_v15  ;;  %v2345_v15 = vmul.f32 1.442695, %v2344_v11 }
0x1e30   :  { %v3511_v43 = vpop.f32.mrf.mxu1 }
0x1e31   :  { %v2514_v52 = vadd.f32 %v4475_v33, %v2511_v42 }
0x1e33   :  { %3595 = vtanh.f32 %v2514_v52 }
0x1e34   :  { %3597 = vpow2.f32 %v864_v35 }
0x1e40   :  { %v3596_v54 = vpop.eup %3595 }
0x1e41   :  { %2692 = vst.msk [vmem:[#allocation3] sm:$0xff] %vm51_vm1, %v3596_v54  ;;  %3521 = vmatmul.mubr.msk.f32.vlgmr.msra.gmra.mxu0 %vm51_vm1, %v3596_v54  ;;  %v3598_v18 = vpop.eup %3597 }
0x1e42   :  { %3524 = vmatpush3.msra.mxu0 %v3639_v56  ;;  %3555 = vmatprep.mubr.msk.f32.mxu0 %vm3701_vm0, %v3700_v0 }
0x1e43   :  { %3525 = vmatprep.subr.mxu0 %v3700_v0 }
0x1e44   :  { %3526 = vmatpush3.msra.mxu0 %v3640_v49 }
0x1e45   :  { %3527 = vmatprep.subr.mxu0 %v3700_v0 }
0x1e46   :  { %3528 = vmatpush3.msra.mxu0 %v3641_v50 }
0x1e47   :  { %3529 = vmatprep.subr.mxu0 %v3700_v0 }
0x1e48   :  { %3530 = vmatpush3.msra.mxu0 %v3642_v57 }
0x1e49   :  { %3531 = vmatprep.subr.mxu0 %v3700_v0 }
0x1e4a   :  { %3532 = vmatpush3.msra.mxu0 %v3643_v58 }
0x1e4b   :  { %3533 = vmatprep.subr.mxu0 %v3700_v0 }
0x1e4c   :  { %3534 = vmatpush3.msra.mxu0 %v3644_v62 }
0x1e4d   :  { %3535 = vmatprep.subr.mxu0 %v3700_v0 }
0x1e4e   :  { %3536 = vmatpush3.msra.mxu0 %v3645_v59 }
0x1e4f   :  { %3537 = vmatprep.subr.mxu0 %v3700_v0 }
0x1e50   :  { %3538 = vmatpush3.msra.mxu0 %v3646_v60 }
0x1e51   :  { %3539 = vmatprep.subr.mxu0 %v3700_v0 }
0x1e52   :  { %3540 = vmatpush3.msra.mxu0 %v3647_v63 }
0x1e53   :  { %3541 = vmatprep.subr.mxu0 %v3700_v0 }
0x1e54   :  { %3542 = vmatpush3.msra.mxu0 %v3648_v1 }
0x1e55   :  { %3543 = vmatprep.subr.mxu0 %v3700_v0 }
0x1e56   :  { %3544 = vmatpush3.msra.mxu0 %v3649_v3 }
0x1e57   :  { %3545 = vmatprep.subr.mxu0 %v3700_v0 }
0x1e58   :  { %3546 = vmatpush3.msra.mxu0 %v3650_v5 }
0x1e59   :  { %3547 = vmatprep.subr.mxu0 %v3700_v0 }
0x1e5a   :  { %3548 = vmatpush3.msra.mxu0 %v3651_v9 }
0x1e5b   :  { %3549 = vmatprep.subr.mxu0 %v3700_v0 }
0x1e5c   :  { %3550 = vmatpush3.msra.mxu0 %v3652_v10 }
0x1e5d   :  { %3551 = vmatprep.subr.mxu0 %v3700_v0 }
0x1e5e   :  { %3552 = vmatpush3.msra.mxu0 %v3653_v24 }
0x1e5f   :  { %3553 = vmatprep.subr.mxu0 %v3700_v0  ;;  %v1357_v0 = vmul.f32 1.442695, %v1356_v38 }
0x1e60   :  { %3554 = vmatpush3.msra.mxu0 %v3654_v26 }
0x1e61   :  { %3599 = vpow2.f32 %v1357_v0 }
0x1e62   :  { %3601 = vpow2.f32 %v1851_v45 }
0x1e63   :  { %3603 = vpow2.f32 %v2345_v15 }
0x1e64   :  { %3605 = vpow2.f32 %v1110_v23 }
0x1e65   :  { %3607 = vpow2.f32 %v1604_v29 }
0x1e66   :  { %3609 = vpow2.f32 %v2098_v48 }
0x1e6e   :  { %v3600_v19 = vpop.eup %3599 }
0x1e6f   :  { %v3602_v20 = vpop.eup %3601 }
0x1e70   :  { %v3604_v21 = vpop.eup %3603 }
0x1e71   :  { %v3606_v56 = vpop.eup %3605 }
0x1e72   :  { %v3608_v50 = vpop.eup %3607 }
0x1e73   :  { %v3610_v58 = vpop.eup %3609 }
0x1f01   :  { %v2585_v27 = vpop.f32.mrf.mxu0 }
0x1f02   :  { %v4616_v31 = vadd.f32 %v4534_v12, %v2585_v27 }
0x1f03   :  { %v3522_v33 = vpop.f32.mrf.mxu0 }
0x1f04   :  { %2589 = vmax.xlane.f32.xlu1 %v4616_v31 }
0x1f8d   :  { %v4625_v44 = vpop.xlane.xlu1 %2589 }
0x1f8e   :  { %vm2602_vm0 = vcmp.eq.f32.partialorder %v4616_v31, %v4625_v44  ;;  %v2591_v51 = vsub.f32 %v4616_v31, %v4625_v44 }
0x1f8f   :  { %v2603_v12 = vsel %vm2602_vm0, %v3992_v6, 128 }
0x1f90   :  { %v2605_v14 = vshra.s32 %v2603_v12, 16  ;;  %v2604_v46 = vand.u32 65535, %v2603_v12  ;;  %v2592_v40 = vmul.f32 1.442695, %v2591_v51 }
0x1f92   :  { %v2607_v16 = vcvt.s32.f32 %v2605_v14  ;;  %v2606_v43 = vcvt.s32.f32 %v2604_v46  ;;  %3611 = vpow2.f32 %v2592_v40 }
0x1f94   :  { %2608 = vmin.xlane.f32.xlu0 %v2607_v16 }
0x1f98   :  { %866 = vadd.xlane.f32.xlu0 %v3598_v18 }
0x1f9c   :  { %1359 = vadd.xlane.f32.xlu0 %v3600_v19 }
0x1f9f   :  { %v3612_v59 = vpop.eup %3611 }
0x1fa0   :  { %1853 = vadd.xlane.f32.xlu0 %v3602_v20 }
0x1fa4   :  { %2347 = vadd.xlane.f32.xlu0 %v3604_v21 }
0x201d   :  { %v2609_v42 = vpop.xlane.xlu0 %2608 }
0x201e   :  { %vm2610_vm9 = vcmp.eq.f32.partialorder %v2607_v16, %v2609_v42  ;;  %v2615_v0 = vcvt.f32.s32 %v2609_v42 }
0x201f   :  { %v2611_v52 = vsel %vm2610_vm9, %v2606_v43, inf }
0x2020   :  { %2612 = vmin.xlane.f32.xlu1 %v2611_v52 }
0x2021   :  { %v867_v54 = vpop.xlane.xlu0 %866 }
0x2022   :  { %3613 = vlog2.f32 %v867_v54 }
0x2024   :  { %1112 = vadd.xlane.f32.xlu1 %v3606_v56 }
0x2025   :  { %v1360_v49 = vpop.xlane.xlu0 %1359 }
0x2026   :  { %3615 = vlog2.f32 %v1360_v49 }
0x2028   :  { %1606 = vadd.xlane.f32.xlu1 %v3608_v50 }
0x2029   :  { %v1854_v57 = vpop.xlane.xlu0 %1853 }
0x202a   :  { %3617 = vlog2.f32 %v1854_v57 }
0x202c   :  { %2100 = vadd.xlane.f32.xlu1 %v3610_v58 }
0x202d   :  { %v2348_v62 = vpop.xlane.xlu0 %2347 }
0x202e   :  { %3619 = vlog2.f32 %v2348_v62 }
0x202f   :  { %v3614_v60 = vpop.eup %3613 }
0x2030   :  { %v869_v63 = vmul.f32 0.6931472, %v3614_v60  ;;  %2594 = vadd.xlane.f32.xlu1 %v3612_v59 }
0x2032   :  { %v870_v1 = vadd.f32 %v869_v63, %v3994_v7 }
0x2033   :  { %v3616_v3 = vpop.eup %3615 }
0x2034   :  { %v871_v5 = vsub.f32 %v3989_v2, %v870_v1  ;;  %v1362_v9 = vmul.f32 0.6931472, %v3616_v3 }
0x2036   :  { %872 = vst [vmem:[#allocation7] sm:$0xff] %v871_v5  ;;  %v1363_v10 = vadd.f32 %v1362_v9, %v4243_v37  ;;  %v2616_v37 = vshll.u32 %v2615_v0, 16 }
0x2037   :  { %v3618_v24 = vpop.eup %3617 }
0x2038   :  { %v1364_v26 = vsub.f32 %v4240_v32, %v1363_v10  ;;  %v1856_v27 = vmul.f32 0.6931472, %v3618_v24 }
0x203a   :  { %1366 = vst [vmem:[#allocation7 + $0x10] sm:$0xff] %v1364_v26  ;;  %v1857_v33 = vadd.f32 %v1856_v27, %v4379_v4 }
0x203b   :  { %v3620_v34 = vpop.eup %3619 }
0x203c   :  { %v1858_v35 = vsub.f32 %v4376_v61, %v1857_v33  ;;  %v2350_v38 = vmul.f32 0.6931472, %v3620_v34 }
0x203e   :  { %1860 = vst [vmem:[#allocation7 + $0x20] sm:$0xff] %v1858_v35  ;;  %v2351_v7 = vadd.f32 %v2350_v38, %v4540_v17 }
0x2040   :  { %v2352_v2 = vsub.f32 %v4537_v13, %v2351_v7 }
0x2042   :  { %2354 = vst [vmem:[#allocation7 + $0x30] sm:$0xff] %v2352_v2 }
0x20a9   :  { %v2613_v39 = vpop.xlane.xlu1 %2612 }
0x20aa   :  { %v2614_v45 = vcvt.f32.s32 %v2613_v39 }
0x20ac   :  { %v2617_v11 = vadd.s32 %v2616_v37, %v2614_v45 }
0x20ad   :  { %v1113_v32 = vpop.xlane.xlu1 %1112 }
0x20ae   :  { %vm2618_vm10 = vcmp.eq.s32.totalorder %v3992_v6, %v2617_v11  ;;  %3621 = vlog2.f32 %v1113_v32 }
0x20af   :  { %3556 = vmatmul.mubr.msk.f32.vlgmr.msra.gmra.mxu0 %vm2618_vm10, %v3702_v36 }
0x20b1   :  { %v1607_v4 = vpop.xlane.xlu1 %1606 }
0x20b2   :  { %3623 = vlog2.f32 %v1607_v4 }
0x20b5   :  { %v2101_v61 = vpop.xlane.xlu1 %2100 }
0x20b6   :  { %3625 = vlog2.f32 %v2101_v61 }
0x20b9   :  { %v2595_v12 = vpop.xlane.xlu1 %2594 }
0x20ba   :  { %3627 = vlog2.f32 %v2595_v12 }
0x20bb   :  { %v3622_v17 = vpop.eup %3621 }
0x20bc   :  { %v1115_v13 = vmul.f32 0.6931472, %v3622_v17 }
0x20be   :  { %v1116_v14 = vadd.f32 %v1115_v13, %v4175_v55 }
0x20bf   :  { %v3624_v15 = vpop.eup %3623 }
0x20c0   :  { %v1117_v16 = vsub.f32 %v4172_v47, %v1116_v14  ;;  %v1609_v18 = vmul.f32 0.6931472, %v3624_v15 }
0x20c2   :  { %1119 = vst [vmem:[#allocation7 + $0x8] sm:$0xff] %v1117_v16  ;;  %v1610_v6 = vadd.f32 %v1609_v18, %v4311_v25 }
0x20c3   :  { %v3626_v19 = vpop.eup %3625 }
0x20c4   :  { %v1611_v36 = vsub.f32 %v4308_v8, %v1610_v6  ;;  %v2103_v20 = vmul.f32 0.6931472, %v3626_v19 }
0x20c6   :  { %1613 = vst [vmem:[#allocation7 + $0x18] sm:$0xff] %v1611_v36  ;;  %v2104_v21 = vadd.f32 %v2103_v20, %v4447_v53 }
0x20c7   :  { %v3628_v22 = vpop.eup %3627 }
0x20c8   :  { %v2105_v23 = vsub.f32 %v4444_v41, %v2104_v21  ;;  %v2597_v28 = vmul.f32 0.6931472, %v3628_v22 }
0x20ca   :  { %2107 = vst [vmem:[#allocation7 + $0x28] sm:$0xff] %v2105_v23  ;;  %v2598_v55 = vadd.f32 %v2597_v28, %v4625_v44 }
0x20cc   :  { %v2599_v47 = vsub.f32 %v4616_v31, %v2598_v55 }
0x20ce   :  { %2601 = vst [vmem:[#allocation7 + $0x38] sm:$0xff] %v2599_v47 }
0x20cf   :  { %3686 = shalt.err (!%p3683_p9)
}
0x20d0   :  { %s3704_s30 = smov 128   ;;  %s3705_s9 = smov 8  }
0x20d1   :  { %2704 = dma.vmem_to_hbm [thread:$0]  %s2699_s28, 1024, %s4670_s8, [#allocation6], %s3704_s30, %s3704_s30, %s3705_s9  }
0x216f   :  { %v2687_v8 = vpop.f32.mrf.mxu0 }
0x2170   :  { %2691 = vst.msk [vmem:[#allocation2] sm:$0xff] %vm51_vm1, %v2687_v8 }
0x2171   :  { %v3557_v25 = vpop.f32.mrf.mxu0 }
0x2172   :  { %3697 = dma.done.wait [#allocation6], 1024  }
0x2173   :  { %3698 = vsyncadd [#allocation6], 4294966272 }
0x2174   :  { %2708 = vsyncpa [#allocation5], 1 }
0x2175   :  { %2709 = vsyncpa [#allocation6], 1 }

</bundles_post_ra>
